<compile_context>
chip_gen: v6e
topology: v6e:2x2x1
jax: 0.10.0
libtpu: 0.0.40
codegen_flags: <defaults>
</compile_context>

<pallas_src>
from functools import partial

import jax
import jax.numpy as jnp
from jax.experimental import pallas as pl
from jax.experimental.pallas import tpu as pltpu


def _lstm_kernel(H, Bp, T,
                 x_ref,      # (T*Bp, D)  compute dtype, time-major rows [t*Bp + b]
                 wih0_ref,   # (D, 4H)    compute dtype (pre-transposed)
                 whh0_ref,   # (H, 4H)    compute dtype (pre-transposed)
                 b0_ref,     # (1, 4H)    f32, b_ih0 + b_hh0
                 wih1_ref,   # (H, 4H)    compute dtype (pre-transposed)
                 whh1_ref,   # (H, 4H)    compute dtype (pre-transposed)
                 b1_ref,     # (1, 4H)    f32, b_ih1 + b_hh1
                 wfc_ref,    # (H, O)     compute dtype (pre-transposed)
                 bfc_ref,    # (1, O)     f32
                 out_ref):   # (Bp, O)    f32 log-probabilities (rows >= B are padding)
    cdt = x_ref.dtype

    # ---- Phase 1: one-shot layer-0 input projection for all timesteps. ----
    # One large-M MXU matmul instead of T tiny ones on the serial chain.
    gin0 = (jnp.dot(x_ref[...], wih0_ref[...],
                    preferred_element_type=jnp.float32)
            + b0_ref[...])                                     # (T*Bp, 4H) f32

    # Hoisted loads / bias broadcast (JAX does not CSE broadcast_in_dim in loops).
    whh0 = whh0_ref[...]
    wih1 = wih1_ref[...]
    whh1 = whh1_ref[...]
    b1 = jnp.broadcast_to(b1_ref[...], (Bp, 4 * H))            # (Bp, 4H) f32

    def gates_to_state(gates, c):
        # PyTorch gate order [i, f, g, o]; gate/state math kept in f32
        # (accuracy + v5e has no bf16 VPU/EUP path).
        i = jax.nn.sigmoid(gates[:, 0 * H:1 * H])
        f = jax.nn.sigmoid(gates[:, 1 * H:2 * H])
        g = jnp.tanh(gates[:, 2 * H:3 * H])
        o = jax.nn.sigmoid(gates[:, 3 * H:4 * H])
        c_new = f * c + i * g
        h_new = o * jnp.tanh(c_new)
        return h_new, c_new

    h0 = jnp.zeros((Bp, H), jnp.float32)
    c0 = jnp.zeros((Bp, H), jnp.float32)
    h1 = jnp.zeros((Bp, H), jnp.float32)
    c1 = jnp.zeros((Bp, H), jnp.float32)

    # ---- Phase 2: fully-unrolled recurrence (T is small and static). ----
    # Unrolling exposes the cross-step independence (layer-1 of step t vs.
    # layer-0 of step t+1) to the LLO scheduler.
    for t in range(T):
        # Layer 0: input projection already done; only the recurrent matmul
        # remains on the serial dependency chain.  The slice below is vreg-row
        # aligned because Bp is a multiple of 8.
        g0 = gin0[t * Bp:(t + 1) * Bp, :] + jnp.dot(
            h0.astype(cdt), whh0, preferred_element_type=jnp.float32)
        h0, c0 = gates_to_state(g0, c0)

        # Layer 1 (input = layer-0 hidden of the SAME timestep).
        # TODO(synk): when H is a multiple of 128 this should become a single
        # fused matmul concat([h0, h1], -1) @ [[W_ih1],[W_hh1]]; at H=32 that
        # concat is an unaligned 32-lane shuffle, so two dots are kept here.
        g1 = (jnp.dot(h0.astype(cdt), wih1, preferred_element_type=jnp.float32)
              + jnp.dot(h1.astype(cdt), whh1, preferred_element_type=jnp.float32)
              + b1)
        h1, c1 = gates_to_state(g1, c1)

    # ---- Phase 3: fused FC + log_softmax(dim=1) on the final hidden state. ----
    logits = (jnp.dot(h1.astype(cdt), wfc_ref[...],
                      preferred_element_type=jnp.float32)
              + bfc_ref[...])                                   # (Bp, O)
    m = jnp.max(logits, axis=-1, keepdims=True)
    lse = jnp.log(jnp.sum(jnp.exp(logits - m), axis=-1, keepdims=True)) + m
    out_ref[...] = logits - lse


def lstm_forward(x, kparams, compute_dtype=jnp.float32):
    """x: (B, T, D) batch_first float32.  Returns (B, O) f32 log-probabilities.

    compute_dtype: dtype of the MXU matmul operands (weights / x / h inputs).
    Use jnp.bfloat16 on v6e / v7x (bf16-native MXU, halves weight DMA + VMEM);
    accumulation and all gate/state math stay float32 either way.
    """
    # TODO(synk): num_layers is hardcoded to 2 in this kernel (matches the module).
    B, T, D = x.shape
    wih0, whh0, b0, wih1, whh1, b1, wfc, bfc = kparams
    H = whh0.shape[0]
    O = wfc.shape[1]
    cdt = compute_dtype

    # Pad batch to the f32 sublane width (>= 8) so all in-kernel per-timestep
    # slices are vreg-row aligned and MXU rows are better occupied.
    Bp = max(8, ((B + 7) // 8) * 8)

    # Time-major, batch-padded, flattened to (T*Bp, D): pure layout plumbing so
    # the layer-0 input projection is one big MXU matmul inside the kernel.
    x_tm = jnp.transpose(x, (1, 0, 2))                       # (T, B, D)
    x_tm = jnp.pad(x_tm, ((0, 0), (0, Bp - B), (0, 0)))      # (T, Bp, D)
    x_flat = x_tm.reshape(T * Bp, D).astype(cdt)             # (T*Bp, D)

    kernel = partial(_lstm_kernel, H, Bp, T)
    vmem = pl.BlockSpec(memory_space=pltpu.MemorySpace.VMEM)

    # Single kernel invocation (no grid): every operand lives fully in VMEM and
    # the timestep loop is unrolled inside the kernel body.
    # TODO(synk): for large B add a leading "parallel" grid axis over batch tiles
    # (v7x: 2 TensorCores), block x over T chunks if T*Bp*D grows large, and set
    # pltpu.CompilerParams(vmem_limit_bytes=...) when weights stop being tiny.
    out = pl.pallas_call(
        kernel,
        out_shape=jax.ShapeDtypeStruct((Bp, O), jnp.float32),
        in_specs=[vmem] * 9,
        out_specs=vmem,
    )(x_flat,
      wih0.astype(cdt), whh0.astype(cdt), b0,
      wih1.astype(cdt), whh1.astype(cdt), b1,
      wfc.astype(cdt), bfc)
    return out[:B]


def init_params(key, D, H, O):
    """Deterministic parameters with PyTorch-style shapes (raw / untransposed)."""
    ks = jax.random.split(key, 10)
    s = 1.0 / jnp.sqrt(jnp.float32(H))
    u = lambda k, shape: jax.random.uniform(k, shape, jnp.float32, -s, s)
    raw = dict(
        wih0=u(ks[0], (4 * H, D)), whh0=u(ks[1], (4 * H, H)),
        bih0=u(ks[2], (4 * H,)), bhh0=u(ks[3], (4 * H,)),
        wih1=u(ks[4], (4 * H, H)), whh1=u(ks[5], (4 * H, H)),
        bih1=u(ks[6], (4 * H,)), bhh1=u(ks[7], (4 * H,)),
        wfc=u(ks[8], (O, H)), bfc=u(ks[9], (O,)),
    )
    # Kernel-friendly layout: transposed weights, fused biases as (1, 4H) rows.
    kparams = (
        raw["wih0"].T, raw["whh0"].T, (raw["bih0"] + raw["bhh0"])[None, :],
        raw["wih1"].T, raw["whh1"].T, (raw["bih1"] + raw["bhh1"])[None, :],
        raw["wfc"].T, raw["bfc"][None, :],
    )
    return raw, kparams


def lstm_reference(x, raw):
    """Pure-JAX mirror of the PyTorch module forward (for validation)."""
    B, T, D = x.shape
    H = raw["whh0"].shape[1]
    h = [jnp.zeros((B, H), jnp.float32), jnp.zeros((B, H), jnp.float32)]
    c = [jnp.zeros((B, H), jnp.float32), jnp.zeros((B, H), jnp.float32)]

    def cell(xin, h, c, wih, whh, bih, bhh):
        gates = xin @ wih.T + h @ whh.T + bih + bhh
        i, f, g, o = jnp.split(gates, 4, axis=1)
        i, f, o = jax.nn.sigmoid(i), jax.nn.sigmoid(f), jax.nn.sigmoid(o)
        g = jnp.tanh(g)
        c_new = f * c + i * g
        return o * jnp.tanh(c_new), c_new

    for t in range(T):
        xt = x[:, t, :]
        h[0], c[0] = cell(xt, h[0], c[0], raw["wih0"], raw["whh0"],
                          raw["bih0"], raw["bhh0"])
        h[1], c[1] = cell(h[0], h[1], c[1], raw["wih1"], raw["whh1"],
                          raw["bih1"], raw["bhh1"])
    logits = h[1] @ raw["wfc"].T + raw["bfc"]
    return jax.nn.log_softmax(logits, axis=1)


if __name__ == "__main__":
    B, T, D, H, O = 2, 8, 16, 32, 10   # batch, seq, input_size, hidden_size, output_size

    key = jax.random.PRNGKey(0)
    kx, kp = jax.random.split(key)
    x = jax.random.normal(kx, (B, T, D), jnp.float32)
    raw, kparams = init_params(kp, D, H, O)

    ref = lstm_reference(x, raw)

    # f32 operand path: tight check against the pure-JAX reference.
    out_f32 = jax.block_until_ready(lstm_forward(x, kparams, jnp.float32))
    assert out_f32.shape == (B, O)
    assert jnp.allclose(out_f32, ref, atol=1e-4, rtol=1e-4), (
        f"f32 mismatch: max err {jnp.max(jnp.abs(out_f32 - ref))}")

    # bf16 MXU-operand path (recommended on v6e / v7x): looser tolerance.
    out_bf16 = jax.block_until_ready(lstm_forward(x, kparams, jnp.bfloat16))
    assert out_bf16.shape == (B, O)
    assert jnp.allclose(out_bf16, ref, atol=5e-2, rtol=5e-2), (
        f"bf16 mismatch: max err {jnp.max(jnp.abs(out_bf16 - ref))}")

    print("KERNEL_OK")
</pallas_src>

<mosaic_0001>
module attributes {stable_mosaic.version = 11 : i64} {
  func.func @_lstm_kernel(%arg0: memref<64x16xf32, #tpu.memory_space<vmem>>, %arg1: memref<16x128xf32, #tpu.memory_space<vmem>>, %arg2: memref<32x128xf32, #tpu.memory_space<vmem>>, %arg3: memref<1x128xf32, #tpu.memory_space<vmem>>, %arg4: memref<32x128xf32, #tpu.memory_space<vmem>>, %arg5: memref<32x128xf32, #tpu.memory_space<vmem>>, %arg6: memref<1x128xf32, #tpu.memory_space<vmem>>, %arg7: memref<32x10xf32, #tpu.memory_space<vmem>>, %arg8: memref<1x10xf32, #tpu.memory_space<vmem>>, %arg9: memref<8x10xf32, #tpu.memory_space<vmem>>) attributes {dimension_semantics = [], scalar_prefetch = 0 : i64, scratch_operands = 0 : i64, tpu.core_type = #tpu.core_type<tc>} {
    %c0 = arith.constant 0 : index
    %c0_0 = arith.constant 0 : index
    %0 = vector.load %arg0[%c0, %c0_0] : memref<64x16xf32, #tpu.memory_space<vmem>>, vector<64x16xf32>
    %c0_1 = arith.constant 0 : index
    %c0_2 = arith.constant 0 : index
    %1 = vector.load %arg1[%c0_1, %c0_2] : memref<16x128xf32, #tpu.memory_space<vmem>>, vector<16x128xf32>
    %cst = arith.constant dense<0.000000e+00> : vector<64x128xf32>
    %2 = tpu.matmul %0, %1, %cst {dimension_numbers = #tpu.dot_dimension_numbers<[1], [0], [0], [1], [0, 0, 1, 1], [], []>} : vector<64x16xf32>, vector<16x128xf32>, vector<64x128xf32> -> vector<64x128xf32>
    %c0_3 = arith.constant 0 : index
    %c0_4 = arith.constant 0 : index
    %3 = vector.load %arg3[%c0_3, %c0_4] : memref<1x128xf32, #tpu.memory_space<vmem>>, vector<1x128xf32>
    %4 = vector.broadcast %3 : vector<1x128xf32> to vector<64x128xf32>
    %5 = arith.addf %2, %4 : vector<64x128xf32>
    %c0_5 = arith.constant 0 : index
    %c0_6 = arith.constant 0 : index
    %6 = vector.load %arg2[%c0_5, %c0_6] : memref<32x128xf32, #tpu.memory_space<vmem>>, vector<32x128xf32>
    %c0_7 = arith.constant 0 : index
    %c0_8 = arith.constant 0 : index
    %7 = vector.load %arg4[%c0_7, %c0_8] : memref<32x128xf32, #tpu.memory_space<vmem>>, vector<32x128xf32>
    %c0_9 = arith.constant 0 : index
    %c0_10 = arith.constant 0 : index
    %8 = vector.load %arg5[%c0_9, %c0_10] : memref<32x128xf32, #tpu.memory_space<vmem>>, vector<32x128xf32>
    %c0_11 = arith.constant 0 : index
    %c0_12 = arith.constant 0 : index
    %9 = vector.load %arg6[%c0_11, %c0_12] : memref<1x128xf32, #tpu.memory_space<vmem>>, vector<1x128xf32>
    %10 = vector.shape_cast %9 : vector<1x128xf32> to vector<1x128xf32>
    %11 = vector.broadcast %10 : vector<1x128xf32> to vector<8x128xf32>
    %cst_13 = arith.constant 0.000000e+00 : f32
    %12 = vector.broadcast %cst_13 : f32 to vector<8x32xf32>
    %cst_14 = arith.constant 0.000000e+00 : f32
    %13 = vector.broadcast %cst_14 : f32 to vector<8x32xf32>
    %cst_15 = arith.constant 0.000000e+00 : f32
    %14 = vector.broadcast %cst_15 : f32 to vector<8x32xf32>
    %cst_16 = arith.constant 0.000000e+00 : f32
    %15 = vector.broadcast %cst_16 : f32 to vector<8x32xf32>
    %16 = vector.extract_strided_slice %5 {offsets = [0, 0], sizes = [8, 128], strides = [1, 1]} : vector<64x128xf32> to vector<8x128xf32>
    %cst_17 = arith.constant dense<0.000000e+00> : vector<8x128xf32>
    %17 = tpu.matmul %12, %6, %cst_17 {dimension_numbers = #tpu.dot_dimension_numbers<[1], [0], [0], [1], [0, 0, 1, 1], [], []>} : vector<8x32xf32>, vector<32x128xf32>, vector<8x128xf32> -> vector<8x128xf32>
    %18 = arith.addf %16, %17 : vector<8x128xf32>
    %19 = vector.extract_strided_slice %18 {offsets = [0, 0], sizes = [8, 32], strides = [1, 1]} : vector<8x128xf32> to vector<8x32xf32>
    %20 = arith.negf %19 : vector<8x32xf32>
    %21 = math.exp %20 : vector<8x32xf32>
    %cst_18 = arith.constant 1.000000e+00 : f32
    %22 = vector.broadcast %cst_18 : f32 to vector<8x32xf32>
    %23 = arith.addf %22, %21 : vector<8x32xf32>
    %24 = arith.divf %22, %23 : vector<8x32xf32>
    %25 = vector.extract_strided_slice %18 {offsets = [0, 32], sizes = [8, 32], strides = [1, 1]} : vector<8x128xf32> to vector<8x32xf32>
    %26 = arith.negf %25 : vector<8x32xf32>
    %27 = math.exp %26 : vector<8x32xf32>
    %cst_19 = arith.constant 1.000000e+00 : f32
    %28 = vector.broadcast %cst_19 : f32 to vector<8x32xf32>
    %29 = arith.addf %28, %27 : vector<8x32xf32>
    %30 = arith.divf %28, %29 : vector<8x32xf32>
    %31 = vector.extract_strided_slice %18 {offsets = [0, 64], sizes = [8, 32], strides = [1, 1]} : vector<8x128xf32> to vector<8x32xf32>
    %32 = math.tanh %31 : vector<8x32xf32>
    %33 = vector.extract_strided_slice %18 {offsets = [0, 96], sizes = [8, 32], strides = [1, 1]} : vector<8x128xf32> to vector<8x32xf32>
    %34 = arith.negf %33 : vector<8x32xf32>
    %35 = math.exp %34 : vector<8x32xf32>
    %cst_20 = arith.constant 1.000000e+00 : f32
    %36 = vector.broadcast %cst_20 : f32 to vector<8x32xf32>
    %37 = arith.addf %36, %35 : vector<8x32xf32>
    %38 = arith.divf %36, %37 : vector<8x32xf32>
    %39 = arith.mulf %30, %13 : vector<8x32xf32>
    %40 = arith.mulf %24, %32 : vector<8x32xf32>
    %41 = arith.addf %39, %40 : vector<8x32xf32>
    %42 = math.tanh %41 : vector<8x32xf32>
    %43 = arith.mulf %38, %42 : vector<8x32xf32>
    %cst_21 = arith.constant dense<0.000000e+00> : vector<8x128xf32>
    %44 = tpu.matmul %43, %7, %cst_21 {dimension_numbers = #tpu.dot_dimension_numbers<[1], [0], [0], [1], [0, 0, 1, 1], [], []>} : vector<8x32xf32>, vector<32x128xf32>, vector<8x128xf32> -> vector<8x128xf32>
    %cst_22 = arith.constant dense<0.000000e+00> : vector<8x128xf32>
    %45 = tpu.matmul %14, %8, %cst_22 {dimension_numbers = #tpu.dot_dimension_numbers<[1], [0], [0], [1], [0, 0, 1, 1], [], []>} : vector<8x32xf32>, vector<32x128xf32>, vector<8x128xf32> -> vector<8x128xf32>
    %46 = arith.addf %44, %45 : vector<8x128xf32>
    %47 = arith.addf %46, %11 : vector<8x128xf32>
    %48 = vector.extract_strided_slice %47 {offsets = [0, 0], sizes = [8, 32], strides = [1, 1]} : vector<8x128xf32> to vector<8x32xf32>
    %49 = arith.negf %48 : vector<8x32xf32>
    %50 = math.exp %49 : vector<8x32xf32>
    %cst_23 = arith.constant 1.000000e+00 : f32
    %51 = vector.broadcast %cst_23 : f32 to vector<8x32xf32>
    %52 = arith.addf %51, %50 : vector<8x32xf32>
    %53 = arith.divf %51, %52 : vector<8x32xf32>
    %54 = vector.extract_strided_slice %47 {offsets = [0, 32], sizes = [8, 32], strides = [1, 1]} : vector<8x128xf32> to vector<8x32xf32>
    %55 = arith.negf %54 : vector<8x32xf32>
    %56 = math.exp %55 : vector<8x32xf32>
    %cst_24 = arith.constant 1.000000e+00 : f32
    %57 = vector.broadcast %cst_24 : f32 to vector<8x32xf32>
    %58 = arith.addf %57, %56 : vector<8x32xf32>
    %59 = arith.divf %57, %58 : vector<8x32xf32>
    %60 = vector.extract_strided_slice %47 {offsets = [0, 64], sizes = [8, 32], strides = [1, 1]} : vector<8x128xf32> to vector<8x32xf32>
    %61 = math.tanh %60 : vector<8x32xf32>
    %62 = vector.extract_strided_slice %47 {offsets = [0, 96], sizes = [8, 32], strides = [1, 1]} : vector<8x128xf32> to vector<8x32xf32>
    %63 = arith.negf %62 : vector<8x32xf32>
    %64 = math.exp %63 : vector<8x32xf32>
    %cst_25 = arith.constant 1.000000e+00 : f32
    %65 = vector.broadcast %cst_25 : f32 to vector<8x32xf32>
    %66 = arith.addf %65, %64 : vector<8x32xf32>
    %67 = arith.divf %65, %66 : vector<8x32xf32>
    %68 = arith.mulf %59, %15 : vector<8x32xf32>
    %69 = arith.mulf %53, %61 : vector<8x32xf32>
    %70 = arith.addf %68, %69 : vector<8x32xf32>
    %71 = math.tanh %70 : vector<8x32xf32>
    %72 = arith.mulf %67, %71 : vector<8x32xf32>
    %73 = vector.extract_strided_slice %5 {offsets = [8, 0], sizes = [8, 128], strides = [1, 1]} : vector<64x128xf32> to vector<8x128xf32>
    %cst_26 = arith.constant dense<0.000000e+00> : vector<8x128xf32>
    %74 = tpu.matmul %43, %6, %cst_26 {dimension_numbers = #tpu.dot_dimension_numbers<[1], [0], [0], [1], [0, 0, 1, 1], [], []>} : vector<8x32xf32>, vector<32x128xf32>, vector<8x128xf32> -> vector<8x128xf32>
    %75 = arith.addf %73, %74 : vector<8x128xf32>
    %76 = vector.extract_strided_slice %75 {offsets = [0, 0], sizes = [8, 32], strides = [1, 1]} : vector<8x128xf32> to vector<8x32xf32>
    %77 = arith.negf %76 : vector<8x32xf32>
    %78 = math.exp %77 : vector<8x32xf32>
    %cst_27 = arith.constant 1.000000e+00 : f32
    %79 = vector.broadcast %cst_27 : f32 to vector<8x32xf32>
    %80 = arith.addf %79, %78 : vector<8x32xf32>
    %81 = arith.divf %79, %80 : vector<8x32xf32>
    %82 = vector.extract_strided_slice %75 {offsets = [0, 32], sizes = [8, 32], strides = [1, 1]} : vector<8x128xf32> to vector<8x32xf32>
    %83 = arith.negf %82 : vector<8x32xf32>
    %84 = math.exp %83 : vector<8x32xf32>
    %cst_28 = arith.constant 1.000000e+00 : f32
    %85 = vector.broadcast %cst_28 : f32 to vector<8x32xf32>
    %86 = arith.addf %85, %84 : vector<8x32xf32>
    %87 = arith.divf %85, %86 : vector<8x32xf32>
    %88 = vector.extract_strided_slice %75 {offsets = [0, 64], sizes = [8, 32], strides = [1, 1]} : vector<8x128xf32> to vector<8x32xf32>
    %89 = math.tanh %88 : vector<8x32xf32>
    %90 = vector.extract_strided_slice %75 {offsets = [0, 96], sizes = [8, 32], strides = [1, 1]} : vector<8x128xf32> to vector<8x32xf32>
    %91 = arith.negf %90 : vector<8x32xf32>
    %92 = math.exp %91 : vector<8x32xf32>
    %cst_29 = arith.constant 1.000000e+00 : f32
    %93 = vector.broadcast %cst_29 : f32 to vector<8x32xf32>
    %94 = arith.addf %93, %92 : vector<8x32xf32>
    %95 = arith.divf %93, %94 : vector<8x32xf32>
    %96 = arith.mulf %87, %41 : vector<8x32xf32>
    %97 = arith.mulf %81, %89 : vector<8x32xf32>
    %98 = arith.addf %96, %97 : vector<8x32xf32>
    %99 = math.tanh %98 : vector<8x32xf32>
    %100 = arith.mulf %95, %99 : vector<8x32xf32>
    %cst_30 = arith.constant dense<0.000000e+00> : vector<8x128xf32>
    %101 = tpu.matmul %100, %7, %cst_30 {dimension_numbers = #tpu.dot_dimension_numbers<[1], [0], [0], [1], [0, 0, 1, 1], [], []>} : vector<8x32xf32>, vector<32x128xf32>, vector<8x128xf32> -> vector<8x128xf32>
    %cst_31 = arith.constant dense<0.000000e+00> : vector<8x128xf32>
    %102 = tpu.matmul %72, %8, %cst_31 {dimension_numbers = #tpu.dot_dimension_numbers<[1], [0], [0], [1], [0, 0, 1, 1], [], []>} : vector<8x32xf32>, vector<32x128xf32>, vector<8x128xf32> -> vector<8x128xf32>
    %103 = arith.addf %101, %102 : vector<8x128xf32>
    %104 = arith.addf %103, %11 : vector<8x128xf32>
    %105 = vector.extract_strided_slice %104 {offsets = [0, 0], sizes = [8, 32], strides = [1, 1]} : vector<8x128xf32> to vector<8x32xf32>
    %106 = arith.negf %105 : vector<8x32xf32>
    %107 = math.exp %106 : vector<8x32xf32>
    %cst_32 = arith.constant 1.000000e+00 : f32
    %108 = vector.broadcast %cst_32 : f32 to vector<8x32xf32>
    %109 = arith.addf %108, %107 : vector<8x32xf32>
    %110 = arith.divf %108, %109 : vector<8x32xf32>
    %111 = vector.extract_strided_slice %104 {offsets = [0, 32], sizes = [8, 32], strides = [1, 1]} : vector<8x128xf32> to vector<8x32xf32>
    %112 = arith.negf %111 : vector<8x32xf32>
    %113 = math.exp %112 : vector<8x32xf32>
    %cst_33 = arith.constant 1.000000e+00 : f32
    %114 = vector.broadcast %cst_33 : f32 to vector<8x32xf32>
    %115 = arith.addf %114, %113 : vector<8x32xf32>
    %116 = arith.divf %114, %115 : vector<8x32xf32>
    %117 = vector.extract_strided_slice %104 {offsets = [0, 64], sizes = [8, 32], strides = [1, 1]} : vector<8x128xf32> to vector<8x32xf32>
    %118 = math.tanh %117 : vector<8x32xf32>
    %119 = vector.extract_strided_slice %104 {offsets = [0, 96], sizes = [8, 32], strides = [1, 1]} : vector<8x128xf32> to vector<8x32xf32>
    %120 = arith.negf %119 : vector<8x32xf32>
    %121 = math.exp %120 : vector<8x32xf32>
    %cst_34 = arith.constant 1.000000e+00 : f32
    %122 = vector.broadcast %cst_34 : f32 to vector<8x32xf32>
    %123 = arith.addf %122, %121 : vector<8x32xf32>
    %124 = arith.divf %122, %123 : vector<8x32xf32>
    %125 = arith.mulf %116, %70 : vector<8x32xf32>
    %126 = arith.mulf %110, %118 : vector<8x32xf32>
    %127 = arith.addf %125, %126 : vector<8x32xf32>
    %128 = math.tanh %127 : vector<8x32xf32>
    %129 = arith.mulf %124, %128 : vector<8x32xf32>
    %130 = vector.extract_strided_slice %5 {offsets = [16, 0], sizes = [8, 128], strides = [1, 1]} : vector<64x128xf32> to vector<8x128xf32>
    %cst_35 = arith.constant dense<0.000000e+00> : vector<8x128xf32>
    %131 = tpu.matmul %100, %6, %cst_35 {dimension_numbers = #tpu.dot_dimension_numbers<[1], [0], [0], [1], [0, 0, 1, 1], [], []>} : vector<8x32xf32>, vector<32x128xf32>, vector<8x128xf32> -> vector<8x128xf32>
    %132 = arith.addf %130, %131 : vector<8x128xf32>
    %133 = vector.extract_strided_slice %132 {offsets = [0, 0], sizes = [8, 32], strides = [1, 1]} : vector<8x128xf32> to vector<8x32xf32>
    %134 = arith.negf %133 : vector<8x32xf32>
    %135 = math.exp %134 : vector<8x32xf32>
    %cst_36 = arith.constant 1.000000e+00 : f32
    %136 = vector.broadcast %cst_36 : f32 to vector<8x32xf32>
    %137 = arith.addf %136, %135 : vector<8x32xf32>
    %138 = arith.divf %136, %137 : vector<8x32xf32>
    %139 = vector.extract_strided_slice %132 {offsets = [0, 32], sizes = [8, 32], strides = [1, 1]} : vector<8x128xf32> to vector<8x32xf32>
    %140 = arith.negf %139 : vector<8x32xf32>
    %141 = math.exp %140 : vector<8x32xf32>
    %cst_37 = arith.constant 1.000000e+00 : f32
    %142 = vector.broadcast %cst_37 : f32 to vector<8x32xf32>
    %143 = arith.addf %142, %141 : vector<8x32xf32>
    %144 = arith.divf %142, %143 : vector<8x32xf32>
    %145 = vector.extract_strided_slice %132 {offsets = [0, 64], sizes = [8, 32], strides = [1, 1]} : vector<8x128xf32> to vector<8x32xf32>
    %146 = math.tanh %145 : vector<8x32xf32>
    %147 = vector.extract_strided_slice %132 {offsets = [0, 96], sizes = [8, 32], strides = [1, 1]} : vector<8x128xf32> to vector<8x32xf32>
    %148 = arith.negf %147 : vector<8x32xf32>
    %149 = math.exp %148 : vector<8x32xf32>
    %cst_38 = arith.constant 1.000000e+00 : f32
    %150 = vector.broadcast %cst_38 : f32 to vector<8x32xf32>
    %151 = arith.addf %150, %149 : vector<8x32xf32>
    %152 = arith.divf %150, %151 : vector<8x32xf32>
    %153 = arith.mulf %144, %98 : vector<8x32xf32>
    %154 = arith.mulf %138, %146 : vector<8x32xf32>
    %155 = arith.addf %153, %154 : vector<8x32xf32>
    %156 = math.tanh %155 : vector<8x32xf32>
    %157 = arith.mulf %152, %156 : vector<8x32xf32>
    %cst_39 = arith.constant dense<0.000000e+00> : vector<8x128xf32>
    %158 = tpu.matmul %157, %7, %cst_39 {dimension_numbers = #tpu.dot_dimension_numbers<[1], [0], [0], [1], [0, 0, 1, 1], [], []>} : vector<8x32xf32>, vector<32x128xf32>, vector<8x128xf32> -> vector<8x128xf32>
    %cst_40 = arith.constant dense<0.000000e+00> : vector<8x128xf32>
    %159 = tpu.matmul %129, %8, %cst_40 {dimension_numbers = #tpu.dot_dimension_numbers<[1], [0], [0], [1], [0, 0, 1, 1], [], []>} : vector<8x32xf32>, vector<32x128xf32>, vector<8x128xf32> -> vector<8x128xf32>
    %160 = arith.addf %158, %159 : vector<8x128xf32>
    %161 = arith.addf %160, %11 : vector<8x128xf32>
    %162 = vector.extract_strided_slice %161 {offsets = [0, 0], sizes = [8, 32], strides = [1, 1]} : vector<8x128xf32> to vector<8x32xf32>
    %163 = arith.negf %162 : vector<8x32xf32>
    %164 = math.exp %163 : vector<8x32xf32>
    %cst_41 = arith.constant 1.000000e+00 : f32
    %165 = vector.broadcast %cst_41 : f32 to vector<8x32xf32>
    %166 = arith.addf %165, %164 : vector<8x32xf32>
    %167 = arith.divf %165, %166 : vector<8x32xf32>
    %168 = vector.extract_strided_slice %161 {offsets = [0, 32], sizes = [8, 32], strides = [1, 1]} : vector<8x128xf32> to vector<8x32xf32>
    %169 = arith.negf %168 : vector<8x32xf32>
    %170 = math.exp %169 : vector<8x32xf32>
    %cst_42 = arith.constant 1.000000e+00 : f32
    %171 = vector.broadcast %cst_42 : f32 to vector<8x32xf32>
    %172 = arith.addf %171, %170 : vector<8x32xf32>
    %173 = arith.divf %171, %172 : vector<8x32xf32>
    %174 = vector.extract_strided_slice %161 {offsets = [0, 64], sizes = [8, 32], strides = [1, 1]} : vector<8x128xf32> to vector<8x32xf32>
    %175 = math.tanh %174 : vector<8x32xf32>
    %176 = vector.extract_strided_slice %161 {offsets = [0, 96], sizes = [8, 32], strides = [1, 1]} : vector<8x128xf32> to vector<8x32xf32>
    %177 = arith.negf %176 : vector<8x32xf32>
    %178 = math.exp %177 : vector<8x32xf32>
    %cst_43 = arith.constant 1.000000e+00 : f32
    %179 = vector.broadcast %cst_43 : f32 to vector<8x32xf32>
    %180 = arith.addf %179, %178 : vector<8x32xf32>
    %181 = arith.divf %179, %180 : vector<8x32xf32>
    %182 = arith.mulf %173, %127 : vector<8x32xf32>
    %183 = arith.mulf %167, %175 : vector<8x32xf32>
    %184 = arith.addf %182, %183 : vector<8x32xf32>
    %185 = math.tanh %184 : vector<8x32xf32>
    %186 = arith.mulf %181, %185 : vector<8x32xf32>
    %187 = vector.extract_strided_slice %5 {offsets = [24, 0], sizes = [8, 128], strides = [1, 1]} : vector<64x128xf32> to vector<8x128xf32>
    %cst_44 = arith.constant dense<0.000000e+00> : vector<8x128xf32>
    %188 = tpu.matmul %157, %6, %cst_44 {dimension_numbers = #tpu.dot_dimension_numbers<[1], [0], [0], [1], [0, 0, 1, 1], [], []>} : vector<8x32xf32>, vector<32x128xf32>, vector<8x128xf32> -> vector<8x128xf32>
    %189 = arith.addf %187, %188 : vector<8x128xf32>
    %190 = vector.extract_strided_slice %189 {offsets = [0, 0], sizes = [8, 32], strides = [1, 1]} : vector<8x128xf32> to vector<8x32xf32>
    %191 = arith.negf %190 : vector<8x32xf32>
    %192 = math.exp %191 : vector<8x32xf32>
    %cst_45 = arith.constant 1.000000e+00 : f32
    %193 = vector.broadcast %cst_45 : f32 to vector<8x32xf32>
    %194 = arith.addf %193, %192 : vector<8x32xf32>
    %195 = arith.divf %193, %194 : vector<8x32xf32>
    %196 = vector.extract_strided_slice %189 {offsets = [0, 32], sizes = [8, 32], strides = [1, 1]} : vector<8x128xf32> to vector<8x32xf32>
    %197 = arith.negf %196 : vector<8x32xf32>
    %198 = math.exp %197 : vector<8x32xf32>
    %cst_46 = arith.constant 1.000000e+00 : f32
    %199 = vector.broadcast %cst_46 : f32 to vector<8x32xf32>
    %200 = arith.addf %199, %198 : vector<8x32xf32>
    %201 = arith.divf %199, %200 : vector<8x32xf32>
    %202 = vector.extract_strided_slice %189 {offsets = [0, 64], sizes = [8, 32], strides = [1, 1]} : vector<8x128xf32> to vector<8x32xf32>
    %203 = math.tanh %202 : vector<8x32xf32>
    %204 = vector.extract_strided_slice %189 {offsets = [0, 96], sizes = [8, 32], strides = [1, 1]} : vector<8x128xf32> to vector<8x32xf32>
    %205 = arith.negf %204 : vector<8x32xf32>
    %206 = math.exp %205 : vector<8x32xf32>
    %cst_47 = arith.constant 1.000000e+00 : f32
    %207 = vector.broadcast %cst_47 : f32 to vector<8x32xf32>
    %208 = arith.addf %207, %206 : vector<8x32xf32>
    %209 = arith.divf %207, %208 : vector<8x32xf32>
    %210 = arith.mulf %201, %155 : vector<8x32xf32>
    %211 = arith.mulf %195, %203 : vector<8x32xf32>
    %212 = arith.addf %210, %211 : vector<8x32xf32>
    %213 = math.tanh %212 : vector<8x32xf32>
    %214 = arith.mulf %209, %213 : vector<8x32xf32>
    %cst_48 = arith.constant dense<0.000000e+00> : vector<8x128xf32>
    %215 = tpu.matmul %214, %7, %cst_48 {dimension_numbers = #tpu.dot_dimension_numbers<[1], [0], [0], [1], [0, 0, 1, 1], [], []>} : vector<8x32xf32>, vector<32x128xf32>, vector<8x128xf32> -> vector<8x128xf32>
    %cst_49 = arith.constant dense<0.000000e+00> : vector<8x128xf32>
    %216 = tpu.matmul %186, %8, %cst_49 {dimension_numbers = #tpu.dot_dimension_numbers<[1], [0], [0], [1], [0, 0, 1, 1], [], []>} : vector<8x32xf32>, vector<32x128xf32>, vector<8x128xf32> -> vector<8x128xf32>
    %217 = arith.addf %215, %216 : vector<8x128xf32>
    %218 = arith.addf %217, %11 : vector<8x128xf32>
    %219 = vector.extract_strided_slice %218 {offsets = [0, 0], sizes = [8, 32], strides = [1, 1]} : vector<8x128xf32> to vector<8x32xf32>
    %220 = arith.negf %219 : vector<8x32xf32>
    %221 = math.exp %220 : vector<8x32xf32>
    %cst_50 = arith.constant 1.000000e+00 : f32
    %222 = vector.broadcast %cst_50 : f32 to vector<8x32xf32>
    %223 = arith.addf %222, %221 : vector<8x32xf32>
    %224 = arith.divf %222, %223 : vector<8x32xf32>
    %225 = vector.extract_strided_slice %218 {offsets = [0, 32], sizes = [8, 32], strides = [1, 1]} : vector<8x128xf32> to vector<8x32xf32>
    %226 = arith.negf %225 : vector<8x32xf32>
    %227 = math.exp %226 : vector<8x32xf32>
    %cst_51 = arith.constant 1.000000e+00 : f32
    %228 = vector.broadcast %cst_51 : f32 to vector<8x32xf32>
    %229 = arith.addf %228, %227 : vector<8x32xf32>
    %230 = arith.divf %228, %229 : vector<8x32xf32>
    %231 = vector.extract_strided_slice %218 {offsets = [0, 64], sizes = [8, 32], strides = [1, 1]} : vector<8x128xf32> to vector<8x32xf32>
    %232 = math.tanh %231 : vector<8x32xf32>
    %233 = vector.extract_strided_slice %218 {offsets = [0, 96], sizes = [8, 32], strides = [1, 1]} : vector<8x128xf32> to vector<8x32xf32>
    %234 = arith.negf %233 : vector<8x32xf32>
    %235 = math.exp %234 : vector<8x32xf32>
    %cst_52 = arith.constant 1.000000e+00 : f32
    %236 = vector.broadcast %cst_52 : f32 to vector<8x32xf32>
    %237 = arith.addf %236, %235 : vector<8x32xf32>
    %238 = arith.divf %236, %237 : vector<8x32xf32>
    %239 = arith.mulf %230, %184 : vector<8x32xf32>
    %240 = arith.mulf %224, %232 : vector<8x32xf32>
    %241 = arith.addf %239, %240 : vector<8x32xf32>
    %242 = math.tanh %241 : vector<8x32xf32>
    %243 = arith.mulf %238, %242 : vector<8x32xf32>
    %244 = vector.extract_strided_slice %5 {offsets = [32, 0], sizes = [8, 128], strides = [1, 1]} : vector<64x128xf32> to vector<8x128xf32>
    %cst_53 = arith.constant dense<0.000000e+00> : vector<8x128xf32>
    %245 = tpu.matmul %214, %6, %cst_53 {dimension_numbers = #tpu.dot_dimension_numbers<[1], [0], [0], [1], [0, 0, 1, 1], [], []>} : vector<8x32xf32>, vector<32x128xf32>, vector<8x128xf32> -> vector<8x128xf32>
    %246 = arith.addf %244, %245 : vector<8x128xf32>
    %247 = vector.extract_strided_slice %246 {offsets = [0, 0], sizes = [8, 32], strides = [1, 1]} : vector<8x128xf32> to vector<8x32xf32>
    %248 = arith.negf %247 : vector<8x32xf32>
    %249 = math.exp %248 : vector<8x32xf32>
    %cst_54 = arith.constant 1.000000e+00 : f32
    %250 = vector.broadcast %cst_54 : f32 to vector<8x32xf32>
    %251 = arith.addf %250, %249 : vector<8x32xf32>
    %252 = arith.divf %250, %251 : vector<8x32xf32>
    %253 = vector.extract_strided_slice %246 {offsets = [0, 32], sizes = [8, 32], strides = [1, 1]} : vector<8x128xf32> to vector<8x32xf32>
    %254 = arith.negf %253 : vector<8x32xf32>
    %255 = math.exp %254 : vector<8x32xf32>
    %cst_55 = arith.constant 1.000000e+00 : f32
    %256 = vector.broadcast %cst_55 : f32 to vector<8x32xf32>
    %257 = arith.addf %256, %255 : vector<8x32xf32>
    %258 = arith.divf %256, %257 : vector<8x32xf32>
    %259 = vector.extract_strided_slice %246 {offsets = [0, 64], sizes = [8, 32], strides = [1, 1]} : vector<8x128xf32> to vector<8x32xf32>
    %260 = math.tanh %259 : vector<8x32xf32>
    %261 = vector.extract_strided_slice %246 {offsets = [0, 96], sizes = [8, 32], strides = [1, 1]} : vector<8x128xf32> to vector<8x32xf32>
    %262 = arith.negf %261 : vector<8x32xf32>
    %263 = math.exp %262 : vector<8x32xf32>
    %cst_56 = arith.constant 1.000000e+00 : f32
    %264 = vector.broadcast %cst_56 : f32 to vector<8x32xf32>
    %265 = arith.addf %264, %263 : vector<8x32xf32>
    %266 = arith.divf %264, %265 : vector<8x32xf32>
    %267 = arith.mulf %258, %212 : vector<8x32xf32>
    %268 = arith.mulf %252, %260 : vector<8x32xf32>
    %269 = arith.addf %267, %268 : vector<8x32xf32>
    %270 = math.tanh %269 : vector<8x32xf32>
    %271 = arith.mulf %266, %270 : vector<8x32xf32>
    %cst_57 = arith.constant dense<0.000000e+00> : vector<8x128xf32>
    %272 = tpu.matmul %271, %7, %cst_57 {dimension_numbers = #tpu.dot_dimension_numbers<[1], [0], [0], [1], [0, 0, 1, 1], [], []>} : vector<8x32xf32>, vector<32x128xf32>, vector<8x128xf32> -> vector<8x128xf32>
    %cst_58 = arith.constant dense<0.000000e+00> : vector<8x128xf32>
    %273 = tpu.matmul %243, %8, %cst_58 {dimension_numbers = #tpu.dot_dimension_numbers<[1], [0], [0], [1], [0, 0, 1, 1], [], []>} : vector<8x32xf32>, vector<32x128xf32>, vector<8x128xf32> -> vector<8x128xf32>
    %274 = arith.addf %272, %273 : vector<8x128xf32>
    %275 = arith.addf %274, %11 : vector<8x128xf32>
    %276 = vector.extract_strided_slice %275 {offsets = [0, 0], sizes = [8, 32], strides = [1, 1]} : vector<8x128xf32> to vector<8x32xf32>
    %277 = arith.negf %276 : vector<8x32xf32>
    %278 = math.exp %277 : vector<8x32xf32>
    %cst_59 = arith.constant 1.000000e+00 : f32
    %279 = vector.broadcast %cst_59 : f32 to vector<8x32xf32>
    %280 = arith.addf %279, %278 : vector<8x32xf32>
    %281 = arith.divf %279, %280 : vector<8x32xf32>
    %282 = vector.extract_strided_slice %275 {offsets = [0, 32], sizes = [8, 32], strides = [1, 1]} : vector<8x128xf32> to vector<8x32xf32>
    %283 = arith.negf %282 : vector<8x32xf32>
    %284 = math.exp %283 : vector<8x32xf32>
    %cst_60 = arith.constant 1.000000e+00 : f32
    %285 = vector.broadcast %cst_60 : f32 to vector<8x32xf32>
    %286 = arith.addf %285, %284 : vector<8x32xf32>
    %287 = arith.divf %285, %286 : vector<8x32xf32>
    %288 = vector.extract_strided_slice %275 {offsets = [0, 64], sizes = [8, 32], strides = [1, 1]} : vector<8x128xf32> to vector<8x32xf32>
    %289 = math.tanh %288 : vector<8x32xf32>
    %290 = vector.extract_strided_slice %275 {offsets = [0, 96], sizes = [8, 32], strides = [1, 1]} : vector<8x128xf32> to vector<8x32xf32>
    %291 = arith.negf %290 : vector<8x32xf32>
    %292 = math.exp %291 : vector<8x32xf32>
    %cst_61 = arith.constant 1.000000e+00 : f32
    %293 = vector.broadcast %cst_61 : f32 to vector<8x32xf32>
    %294 = arith.addf %293, %292 : vector<8x32xf32>
    %295 = arith.divf %293, %294 : vector<8x32xf32>
    %296 = arith.mulf %287, %241 : vector<8x32xf32>
    %297 = arith.mulf %281, %289 : vector<8x32xf32>
    %298 = arith.addf %296, %297 : vector<8x32xf32>
    %299 = math.tanh %298 : vector<8x32xf32>
    %300 = arith.mulf %295, %299 : vector<8x32xf32>
    %301 = vector.extract_strided_slice %5 {offsets = [40, 0], sizes = [8, 128], strides = [1, 1]} : vector<64x128xf32> to vector<8x128xf32>
    %cst_62 = arith.constant dense<0.000000e+00> : vector<8x128xf32>
    %302 = tpu.matmul %271, %6, %cst_62 {dimension_numbers = #tpu.dot_dimension_numbers<[1], [0], [0], [1], [0, 0, 1, 1], [], []>} : vector<8x32xf32>, vector<32x128xf32>, vector<8x128xf32> -> vector<8x128xf32>
    %303 = arith.addf %301, %302 : vector<8x128xf32>
    %304 = vector.extract_strided_slice %303 {offsets = [0, 0], sizes = [8, 32], strides = [1, 1]} : vector<8x128xf32> to vector<8x32xf32>
    %305 = arith.negf %304 : vector<8x32xf32>
    %306 = math.exp %305 : vector<8x32xf32>
    %cst_63 = arith.constant 1.000000e+00 : f32
    %307 = vector.broadcast %cst_63 : f32 to vector<8x32xf32>
    %308 = arith.addf %307, %306 : vector<8x32xf32>
    %309 = arith.divf %307, %308 : vector<8x32xf32>
    %310 = vector.extract_strided_slice %303 {offsets = [0, 32], sizes = [8, 32], strides = [1, 1]} : vector<8x128xf32> to vector<8x32xf32>
    %311 = arith.negf %310 : vector<8x32xf32>
    %312 = math.exp %311 : vector<8x32xf32>
    %cst_64 = arith.constant 1.000000e+00 : f32
    %313 = vector.broadcast %cst_64 : f32 to vector<8x32xf32>
    %314 = arith.addf %313, %312 : vector<8x32xf32>
    %315 = arith.divf %313, %314 : vector<8x32xf32>
    %316 = vector.extract_strided_slice %303 {offsets = [0, 64], sizes = [8, 32], strides = [1, 1]} : vector<8x128xf32> to vector<8x32xf32>
    %317 = math.tanh %316 : vector<8x32xf32>
    %318 = vector.extract_strided_slice %303 {offsets = [0, 96], sizes = [8, 32], strides = [1, 1]} : vector<8x128xf32> to vector<8x32xf32>
    %319 = arith.negf %318 : vector<8x32xf32>
    %320 = math.exp %319 : vector<8x32xf32>
    %cst_65 = arith.constant 1.000000e+00 : f32
    %321 = vector.broadcast %cst_65 : f32 to vector<8x32xf32>
    %322 = arith.addf %321, %320 : vector<8x32xf32>
    %323 = arith.divf %321, %322 : vector<8x32xf32>
    %324 = arith.mulf %315, %269 : vector<8x32xf32>
    %325 = arith.mulf %309, %317 : vector<8x32xf32>
    %326 = arith.addf %324, %325 : vector<8x32xf32>
    %327 = math.tanh %326 : vector<8x32xf32>
    %328 = arith.mulf %323, %327 : vector<8x32xf32>
    %cst_66 = arith.constant dense<0.000000e+00> : vector<8x128xf32>
    %329 = tpu.matmul %328, %7, %cst_66 {dimension_numbers = #tpu.dot_dimension_numbers<[1], [0], [0], [1], [0, 0, 1, 1], [], []>} : vector<8x32xf32>, vector<32x128xf32>, vector<8x128xf32> -> vector<8x128xf32>
    %cst_67 = arith.constant dense<0.000000e+00> : vector<8x128xf32>
    %330 = tpu.matmul %300, %8, %cst_67 {dimension_numbers = #tpu.dot_dimension_numbers<[1], [0], [0], [1], [0, 0, 1, 1], [], []>} : vector<8x32xf32>, vector<32x128xf32>, vector<8x128xf32> -> vector<8x128xf32>
    %331 = arith.addf %329, %330 : vector<8x128xf32>
    %332 = arith.addf %331, %11 : vector<8x128xf32>
    %333 = vector.extract_strided_slice %332 {offsets = [0, 0], sizes = [8, 32], strides = [1, 1]} : vector<8x128xf32> to vector<8x32xf32>
    %334 = arith.negf %333 : vector<8x32xf32>
    %335 = math.exp %334 : vector<8x32xf32>
    %cst_68 = arith.constant 1.000000e+00 : f32
    %336 = vector.broadcast %cst_68 : f32 to vector<8x32xf32>
    %337 = arith.addf %336, %335 : vector<8x32xf32>
    %338 = arith.divf %336, %337 : vector<8x32xf32>
    %339 = vector.extract_strided_slice %332 {offsets = [0, 32], sizes = [8, 32], strides = [1, 1]} : vector<8x128xf32> to vector<8x32xf32>
    %340 = arith.negf %339 : vector<8x32xf32>
    %341 = math.exp %340 : vector<8x32xf32>
    %cst_69 = arith.constant 1.000000e+00 : f32
    %342 = vector.broadcast %cst_69 : f32 to vector<8x32xf32>
    %343 = arith.addf %342, %341 : vector<8x32xf32>
    %344 = arith.divf %342, %343 : vector<8x32xf32>
    %345 = vector.extract_strided_slice %332 {offsets = [0, 64], sizes = [8, 32], strides = [1, 1]} : vector<8x128xf32> to vector<8x32xf32>
    %346 = math.tanh %345 : vector<8x32xf32>
    %347 = vector.extract_strided_slice %332 {offsets = [0, 96], sizes = [8, 32], strides = [1, 1]} : vector<8x128xf32> to vector<8x32xf32>
    %348 = arith.negf %347 : vector<8x32xf32>
    %349 = math.exp %348 : vector<8x32xf32>
    %cst_70 = arith.constant 1.000000e+00 : f32
    %350 = vector.broadcast %cst_70 : f32 to vector<8x32xf32>
    %351 = arith.addf %350, %349 : vector<8x32xf32>
    %352 = arith.divf %350, %351 : vector<8x32xf32>
    %353 = arith.mulf %344, %298 : vector<8x32xf32>
    %354 = arith.mulf %338, %346 : vector<8x32xf32>
    %355 = arith.addf %353, %354 : vector<8x32xf32>
    %356 = math.tanh %355 : vector<8x32xf32>
    %357 = arith.mulf %352, %356 : vector<8x32xf32>
    %358 = vector.extract_strided_slice %5 {offsets = [48, 0], sizes = [8, 128], strides = [1, 1]} : vector<64x128xf32> to vector<8x128xf32>
    %cst_71 = arith.constant dense<0.000000e+00> : vector<8x128xf32>
    %359 = tpu.matmul %328, %6, %cst_71 {dimension_numbers = #tpu.dot_dimension_numbers<[1], [0], [0], [1], [0, 0, 1, 1], [], []>} : vector<8x32xf32>, vector<32x128xf32>, vector<8x128xf32> -> vector<8x128xf32>
    %360 = arith.addf %358, %359 : vector<8x128xf32>
    %361 = vector.extract_strided_slice %360 {offsets = [0, 0], sizes = [8, 32], strides = [1, 1]} : vector<8x128xf32> to vector<8x32xf32>
    %362 = arith.negf %361 : vector<8x32xf32>
    %363 = math.exp %362 : vector<8x32xf32>
    %cst_72 = arith.constant 1.000000e+00 : f32
    %364 = vector.broadcast %cst_72 : f32 to vector<8x32xf32>
    %365 = arith.addf %364, %363 : vector<8x32xf32>
    %366 = arith.divf %364, %365 : vector<8x32xf32>
    %367 = vector.extract_strided_slice %360 {offsets = [0, 32], sizes = [8, 32], strides = [1, 1]} : vector<8x128xf32> to vector<8x32xf32>
    %368 = arith.negf %367 : vector<8x32xf32>
    %369 = math.exp %368 : vector<8x32xf32>
    %cst_73 = arith.constant 1.000000e+00 : f32
    %370 = vector.broadcast %cst_73 : f32 to vector<8x32xf32>
    %371 = arith.addf %370, %369 : vector<8x32xf32>
    %372 = arith.divf %370, %371 : vector<8x32xf32>
    %373 = vector.extract_strided_slice %360 {offsets = [0, 64], sizes = [8, 32], strides = [1, 1]} : vector<8x128xf32> to vector<8x32xf32>
    %374 = math.tanh %373 : vector<8x32xf32>
    %375 = vector.extract_strided_slice %360 {offsets = [0, 96], sizes = [8, 32], strides = [1, 1]} : vector<8x128xf32> to vector<8x32xf32>
    %376 = arith.negf %375 : vector<8x32xf32>
    %377 = math.exp %376 : vector<8x32xf32>
    %cst_74 = arith.constant 1.000000e+00 : f32
    %378 = vector.broadcast %cst_74 : f32 to vector<8x32xf32>
    %379 = arith.addf %378, %377 : vector<8x32xf32>
    %380 = arith.divf %378, %379 : vector<8x32xf32>
    %381 = arith.mulf %372, %326 : vector<8x32xf32>
    %382 = arith.mulf %366, %374 : vector<8x32xf32>
    %383 = arith.addf %381, %382 : vector<8x32xf32>
    %384 = math.tanh %383 : vector<8x32xf32>
    %385 = arith.mulf %380, %384 : vector<8x32xf32>
    %cst_75 = arith.constant dense<0.000000e+00> : vector<8x128xf32>
    %386 = tpu.matmul %385, %7, %cst_75 {dimension_numbers = #tpu.dot_dimension_numbers<[1], [0], [0], [1], [0, 0, 1, 1], [], []>} : vector<8x32xf32>, vector<32x128xf32>, vector<8x128xf32> -> vector<8x128xf32>
    %cst_76 = arith.constant dense<0.000000e+00> : vector<8x128xf32>
    %387 = tpu.matmul %357, %8, %cst_76 {dimension_numbers = #tpu.dot_dimension_numbers<[1], [0], [0], [1], [0, 0, 1, 1], [], []>} : vector<8x32xf32>, vector<32x128xf32>, vector<8x128xf32> -> vector<8x128xf32>
    %388 = arith.addf %386, %387 : vector<8x128xf32>
    %389 = arith.addf %388, %11 : vector<8x128xf32>
    %390 = vector.extract_strided_slice %389 {offsets = [0, 0], sizes = [8, 32], strides = [1, 1]} : vector<8x128xf32> to vector<8x32xf32>
    %391 = arith.negf %390 : vector<8x32xf32>
    %392 = math.exp %391 : vector<8x32xf32>
    %cst_77 = arith.constant 1.000000e+00 : f32
    %393 = vector.broadcast %cst_77 : f32 to vector<8x32xf32>
    %394 = arith.addf %393, %392 : vector<8x32xf32>
    %395 = arith.divf %393, %394 : vector<8x32xf32>
    %396 = vector.extract_strided_slice %389 {offsets = [0, 32], sizes = [8, 32], strides = [1, 1]} : vector<8x128xf32> to vector<8x32xf32>
    %397 = arith.negf %396 : vector<8x32xf32>
    %398 = math.exp %397 : vector<8x32xf32>
    %cst_78 = arith.constant 1.000000e+00 : f32
    %399 = vector.broadcast %cst_78 : f32 to vector<8x32xf32>
    %400 = arith.addf %399, %398 : vector<8x32xf32>
    %401 = arith.divf %399, %400 : vector<8x32xf32>
    %402 = vector.extract_strided_slice %389 {offsets = [0, 64], sizes = [8, 32], strides = [1, 1]} : vector<8x128xf32> to vector<8x32xf32>
    %403 = math.tanh %402 : vector<8x32xf32>
    %404 = vector.extract_strided_slice %389 {offsets = [0, 96], sizes = [8, 32], strides = [1, 1]} : vector<8x128xf32> to vector<8x32xf32>
    %405 = arith.negf %404 : vector<8x32xf32>
    %406 = math.exp %405 : vector<8x32xf32>
    %cst_79 = arith.constant 1.000000e+00 : f32
    %407 = vector.broadcast %cst_79 : f32 to vector<8x32xf32>
    %408 = arith.addf %407, %406 : vector<8x32xf32>
    %409 = arith.divf %407, %408 : vector<8x32xf32>
    %410 = arith.mulf %401, %355 : vector<8x32xf32>
    %411 = arith.mulf %395, %403 : vector<8x32xf32>
    %412 = arith.addf %410, %411 : vector<8x32xf32>
    %413 = math.tanh %412 : vector<8x32xf32>
    %414 = arith.mulf %409, %413 : vector<8x32xf32>
    %415 = vector.extract_strided_slice %5 {offsets = [56, 0], sizes = [8, 128], strides = [1, 1]} : vector<64x128xf32> to vector<8x128xf32>
    %cst_80 = arith.constant dense<0.000000e+00> : vector<8x128xf32>
    %416 = tpu.matmul %385, %6, %cst_80 {dimension_numbers = #tpu.dot_dimension_numbers<[1], [0], [0], [1], [0, 0, 1, 1], [], []>} : vector<8x32xf32>, vector<32x128xf32>, vector<8x128xf32> -> vector<8x128xf32>
    %417 = arith.addf %415, %416 : vector<8x128xf32>
    %418 = vector.extract_strided_slice %417 {offsets = [0, 0], sizes = [8, 32], strides = [1, 1]} : vector<8x128xf32> to vector<8x32xf32>
    %419 = arith.negf %418 : vector<8x32xf32>
    %420 = math.exp %419 : vector<8x32xf32>
    %cst_81 = arith.constant 1.000000e+00 : f32
    %421 = vector.broadcast %cst_81 : f32 to vector<8x32xf32>
    %422 = arith.addf %421, %420 : vector<8x32xf32>
    %423 = arith.divf %421, %422 : vector<8x32xf32>
    %424 = vector.extract_strided_slice %417 {offsets = [0, 32], sizes = [8, 32], strides = [1, 1]} : vector<8x128xf32> to vector<8x32xf32>
    %425 = arith.negf %424 : vector<8x32xf32>
    %426 = math.exp %425 : vector<8x32xf32>
    %cst_82 = arith.constant 1.000000e+00 : f32
    %427 = vector.broadcast %cst_82 : f32 to vector<8x32xf32>
    %428 = arith.addf %427, %426 : vector<8x32xf32>
    %429 = arith.divf %427, %428 : vector<8x32xf32>
    %430 = vector.extract_strided_slice %417 {offsets = [0, 64], sizes = [8, 32], strides = [1, 1]} : vector<8x128xf32> to vector<8x32xf32>
    %431 = math.tanh %430 : vector<8x32xf32>
    %432 = vector.extract_strided_slice %417 {offsets = [0, 96], sizes = [8, 32], strides = [1, 1]} : vector<8x128xf32> to vector<8x32xf32>
    %433 = arith.negf %432 : vector<8x32xf32>
    %434 = math.exp %433 : vector<8x32xf32>
    %cst_83 = arith.constant 1.000000e+00 : f32
    %435 = vector.broadcast %cst_83 : f32 to vector<8x32xf32>
    %436 = arith.addf %435, %434 : vector<8x32xf32>
    %437 = arith.divf %435, %436 : vector<8x32xf32>
    %438 = arith.mulf %429, %383 : vector<8x32xf32>
    %439 = arith.mulf %423, %431 : vector<8x32xf32>
    %440 = arith.addf %438, %439 : vector<8x32xf32>
    %441 = math.tanh %440 : vector<8x32xf32>
    %442 = arith.mulf %437, %441 : vector<8x32xf32>
    %cst_84 = arith.constant dense<0.000000e+00> : vector<8x128xf32>
    %443 = tpu.matmul %442, %7, %cst_84 {dimension_numbers = #tpu.dot_dimension_numbers<[1], [0], [0], [1], [0, 0, 1, 1], [], []>} : vector<8x32xf32>, vector<32x128xf32>, vector<8x128xf32> -> vector<8x128xf32>
    %cst_85 = arith.constant dense<0.000000e+00> : vector<8x128xf32>
    %444 = tpu.matmul %414, %8, %cst_85 {dimension_numbers = #tpu.dot_dimension_numbers<[1], [0], [0], [1], [0, 0, 1, 1], [], []>} : vector<8x32xf32>, vector<32x128xf32>, vector<8x128xf32> -> vector<8x128xf32>
    %445 = arith.addf %443, %444 : vector<8x128xf32>
    %446 = arith.addf %445, %11 : vector<8x128xf32>
    %447 = vector.extract_strided_slice %446 {offsets = [0, 0], sizes = [8, 32], strides = [1, 1]} : vector<8x128xf32> to vector<8x32xf32>
    %448 = arith.negf %447 : vector<8x32xf32>
    %449 = math.exp %448 : vector<8x32xf32>
    %cst_86 = arith.constant 1.000000e+00 : f32
    %450 = vector.broadcast %cst_86 : f32 to vector<8x32xf32>
    %451 = arith.addf %450, %449 : vector<8x32xf32>
    %452 = arith.divf %450, %451 : vector<8x32xf32>
    %453 = vector.extract_strided_slice %446 {offsets = [0, 32], sizes = [8, 32], strides = [1, 1]} : vector<8x128xf32> to vector<8x32xf32>
    %454 = arith.negf %453 : vector<8x32xf32>
    %455 = math.exp %454 : vector<8x32xf32>
    %cst_87 = arith.constant 1.000000e+00 : f32
    %456 = vector.broadcast %cst_87 : f32 to vector<8x32xf32>
    %457 = arith.addf %456, %455 : vector<8x32xf32>
    %458 = arith.divf %456, %457 : vector<8x32xf32>
    %459 = vector.extract_strided_slice %446 {offsets = [0, 64], sizes = [8, 32], strides = [1, 1]} : vector<8x128xf32> to vector<8x32xf32>
    %460 = math.tanh %459 : vector<8x32xf32>
    %461 = vector.extract_strided_slice %446 {offsets = [0, 96], sizes = [8, 32], strides = [1, 1]} : vector<8x128xf32> to vector<8x32xf32>
    %462 = arith.negf %461 : vector<8x32xf32>
    %463 = math.exp %462 : vector<8x32xf32>
    %cst_88 = arith.constant 1.000000e+00 : f32
    %464 = vector.broadcast %cst_88 : f32 to vector<8x32xf32>
    %465 = arith.addf %464, %463 : vector<8x32xf32>
    %466 = arith.divf %464, %465 : vector<8x32xf32>
    %467 = arith.mulf %458, %412 : vector<8x32xf32>
    %468 = arith.mulf %452, %460 : vector<8x32xf32>
    %469 = arith.addf %467, %468 : vector<8x32xf32>
    %470 = math.tanh %469 : vector<8x32xf32>
    %471 = arith.mulf %466, %470 : vector<8x32xf32>
    %c0_89 = arith.constant 0 : index
    %c0_90 = arith.constant 0 : index
    %472 = vector.load %arg7[%c0_89, %c0_90] : memref<32x10xf32, #tpu.memory_space<vmem>>, vector<32x10xf32>
    %cst_91 = arith.constant dense<0.000000e+00> : vector<8x10xf32>
    %473 = tpu.matmul %471, %472, %cst_91 {dimension_numbers = #tpu.dot_dimension_numbers<[1], [0], [0], [1], [0, 0, 1, 1], [], []>} : vector<8x32xf32>, vector<32x10xf32>, vector<8x10xf32> -> vector<8x10xf32>
    %c0_92 = arith.constant 0 : index
    %c0_93 = arith.constant 0 : index
    %474 = vector.load %arg8[%c0_92, %c0_93] : memref<1x10xf32, #tpu.memory_space<vmem>>, vector<1x10xf32>
    %475 = vector.broadcast %474 : vector<1x10xf32> to vector<8x10xf32>
    %476 = arith.addf %473, %475 : vector<8x10xf32>
    %cst_94 = arith.constant dense<0xFF800000> : vector<8xf32>
    %477 = vector.multi_reduction <maximumf>, %476, %cst_94 [1] : vector<8x10xf32> to vector<8xf32>
    %478 = vector.shape_cast %477 : vector<8xf32> to vector<8x1xf32>
    %479 = vector.broadcast %478 : vector<8x1xf32> to vector<8x10xf32>
    %480 = arith.subf %476, %479 : vector<8x10xf32>
    %481 = math.exp %480 : vector<8x10xf32>
    %cst_95 = arith.constant dense<0.000000e+00> : vector<8xf32>
    %482 = vector.multi_reduction <add>, %481, %cst_95 [1] : vector<8x10xf32> to vector<8xf32>
    %483 = vector.shape_cast %482 : vector<8xf32> to vector<8x1xf32>
    %484 = math.log %483 : vector<8x1xf32>
    %485 = arith.addf %484, %478 : vector<8x1xf32>
    %486 = vector.broadcast %485 : vector<8x1xf32> to vector<8x10xf32>
    %487 = arith.subf %476, %486 : vector<8x10xf32>
    %c0_96 = arith.constant 0 : index
    %c0_97 = arith.constant 0 : index
    %488 = vector.load %arg9[%c0_96, %c0_97] : memref<8x10xf32, #tpu.memory_space<vmem>>, vector<8x10xf32>
    tpu.vector_store %arg9[%c0_96, %c0_97], %487 {strides = array<i32>} : memref<8x10xf32, #tpu.memory_space<vmem>>, vector<8x10xf32>,
    return
  }
}

</mosaic_0001>

<bundles_post_ra>
// kernel: tpu_custom_call.1
= control target key start
LH: loop header
LB: loop body
LE: loop exit
PB: predicated region body
PF: predicated region fallthrough
CT: control target
= control target key end

     0   :  { %v3122_v3 = vmov 0.0   ;;  %vm50_vm0 = vcmask 130048   ;;  %s3773_s0 = inlined_call_operand.vmem [shape: f32[64,16], index: 0, kind: input, shape index: {}]   ;;  %s3774_s1 = inlined_call_operand.vmem [shape: f32[16,128], index: 1, kind: input, shape index: {}]   ;;  %s3775_s2 = inlined_call_operand.vmem [shape: f32[32,128], index: 2, kind: input, shape index: {}]   ;;  %s3776_s3 = inlined_call_operand.vmem [shape: f32[1,128], index: 3, kind: input, shape index: {}]   ;;  %s3777_s4 = inlined_call_operand.vmem [shape: f32[32,128], index: 4, kind: input, shape index: {}]   ;;  %s3778_s5 = inlined_call_operand.vmem [shape: f32[32,128], index: 5, kind: input, shape index: {}]   ;;  %s3779_s6 = inlined_call_operand.vmem [shape: f32[1,128], index: 6, kind: input, shape index: {}]   ;;  %s3780_s7 = inlined_call_operand.vmem [shape: f32[32,10], index: 7, kind: input, shape index: {}]   ;;  %s3781_s8 = inlined_call_operand.vmem [shape: f32[1,10], index: 8, kind: input, shape index: {}]   ;;  %s3782_s9 = inlined_call_operand.hbm [shape: f32[8,10], index: 9, kind: output, shape index: {}]  }
   0x1   :  { %v42_v0 = vld [vmem:[%s3774_s1 + $0x8] sm:$0xff]  ;;  %v3183_v1 = vld [vmem:[%s3775_s2 + $0x18] sm:$0xff]  ;;  %v41_v2 = vld [vmem:[%s3774_s1] sm:$0xff]  ;;  %2674 = vmatprep.subr.mxu1 %v3122_v3 }
   0x2   :  { %2658 = vmatprep.subr.mxu0 %v42_v0  ;;  %v33_v4 = vld [vmem:[%s3773_s0] sm:$0xff]  ;;  %2675 = vmatpush3.msra.mxu1 %v3183_v1  ;;  %v3196_v5 = vld [vmem:[%s3775_s2 + $0x10] sm:$0xff]  ;;  %v34_v6 = vld [vmem:[%s3773_s0 + $0x8] sm:$0xff] }
   0x3   :  { %2659 = vmatpush3.msra.mxu0 %v42_v0 }
   0x4   :  { %14 = vsyncpa [#allocation3], 0  ;;  %2660 = vmatprep.subr.mxu0 %v41_v2  ;;  %2676 = vmatprep.subr.mxu1 %v3122_v3  ;;  %v3206_v7 = vld [vmem:[%s3775_s2 + $0x8] sm:$0xff]  ;;  %v3214_v8 = vld [vmem:[%s3775_s2] sm:$0xff]  ;;  %vm3123_vm1 = vmmov 0   ;;  %s3124_s26 = smov 64  }
   0x5   :  { %2661 = vmatpush3.msra.mxu0 %v41_v2  ;;  %2662 = vmatprep.mubr.msk.f32.mxu0 %vm50_vm0, %v33_v4  ;;  %v3231_v10 = vld [vmem:[%s3776_s3] ss:$0 sm:$0xff]  ;;  %s3125_s27 = smov 32   ;;  %v3242_v26 = vld [vmem:[%s3777_s4 + $0x18] sm:$0xff]  ;;  %v35_v27 = vld [vmem:[%s3773_s0 + $0x10] sm:$0xff]  ;;  %vm199_vm2 = vcmask 261120  }
   0x6   :  { %2677 = vmatpush3.msra.mxu1 %v3196_v5  ;;  %2663 = vmatmul.mubr.msk.f32.vlgmr.msra.gmra.mxu0 %vm50_vm0, %v34_v6  ;;  %v3250_v28 = vld [vmem:[%s3778_s5 + $0x18] sm:$0xff]  ;;  %v3260_v30 = vld [vmem:[%s3778_s5 + $0x10] sm:$0xff]  ;;  %v37_v32 = vld [vmem:[%s3773_s0 + $0x20] sm:$0xff]  ;;  %vm2444_vm3 = vcmask 80896  }
   0x7   :  { %2678 = vmatprep.subr.mxu1 %v3122_v3  ;;  %2682 = vmatprep.mubr.msk.f32.mxu1 %vm3123_vm1, %v3122_v3  ;;  %v36_v29 = vld [vmem:[%s3773_s0 + $0x18] sm:$0xff]  ;;  %v3265_v31 = vld [vmem:[%s3777_s4 + $0x10] sm:$0xff]  ;;  %v3277_v33 = vld [vmem:[%s3778_s5 + $0x8] sm:$0xff] }
   0x8   :  { %2679 = vmatpush3.msra.mxu1 %v3206_v7  ;;  %2696 = vmatprep.subr.mxu0 %v3122_v3  ;;  %v38_v34 = vld [vmem:[%s3773_s0 + $0x28] sm:$0xff]  ;;  %v3289_v35 = vld [vmem:[%s3778_s5] sm:$0xff]  ;;  %v39_v37 = vld [vmem:[%s3773_s0 + $0x30] sm:$0xff] }
   0x9   :  { %2680 = vmatprep.subr.mxu1 %v3122_v3  ;;  %2697 = vmatpush3.msra.mxu0 %v3242_v26  ;;  %v3294_v36 = vld [vmem:[%s3777_s4 + $0x8] sm:$0xff]  ;;  %v40_v38 = vld [vmem:[%s3773_s0 + $0x38] sm:$0xff]  ;;  %v3315_v40 = vld [vmem:[%s3777_s4] sm:$0xff] }
   0xa   :  { %2681 = vmatpush3.msra.mxu1 %v3214_v8  ;;  %2665 = vmatprep.mubr.msk.f32.mxu0 %vm50_vm0, %v35_v27  ;;  %v3373_v53 = vld [vmem:[%s3779_s6] ss:$0 sm:$0xff] }
   0xb   :  { %2683 = vmatmul.mubr.f32.vlgmr.msra.gmra.mxu1 %v3122_v3  ;;  %2685 = vmatprep.subr.mxu1 %v3122_v3 }
   0xc   :  { %2693 = vmatprep.mubr.msk.f32.mxu1 %vm3123_vm1, %v3122_v3  ;;  %2686 = vmatpush3.msra.mxu1 %v3250_v28 }
   0xd   :  { %2666 = vmatmul.mubr.msk.f32.gmra.mxu0 %vm50_vm0, %v36_v29  ;;  %2687 = vmatprep.subr.mxu1 %v3122_v3 }
   0xe   :  { %2698 = vmatprep.subr.mxu0 %v3122_v3  ;;  %2688 = vmatpush3.msra.mxu1 %v3260_v30 }
   0xf   :  { %2699 = vmatpush3.msra.mxu0 %v3265_v31  ;;  %2689 = vmatprep.subr.mxu1 %v3122_v3 }
  0x10   :  { %2668 = vmatprep.mubr.msk.f32.mxu0 %vm50_vm0, %v37_v32  ;;  %2690 = vmatpush3.msra.mxu1 %v3277_v33 }
  0x11   :  { %2669 = vmatmul.mubr.msk.f32.gmra.mxu0 %vm50_vm0, %v38_v34  ;;  %2691 = vmatprep.subr.mxu1 %v3122_v3 }
  0x12   :  { %2700 = vmatprep.subr.mxu0 %v3122_v3  ;;  %2692 = vmatpush3.msra.mxu1 %v3289_v35 }
  0x13   :  { %2701 = vmatpush3.msra.mxu0 %v3294_v36  ;;  %2707 = vmatprep.subr.mxu1 %v3122_v3 }
  0x14   :  { %2671 = vmatprep.mubr.msk.f32.mxu0 %vm50_vm0, %v39_v37  ;;  %2694 = vmatmul.mubr.f32.vlgmr.msra.gmra.mxu1 %v3122_v3 }
  0x15   :  { %2672 = vmatmul.mubr.msk.f32.gmra.mxu0 %vm50_vm0, %v40_v38  ;;  %2708 = vmatpush3.msra.mxu1 %v3183_v1 }
  0x16   :  { %2709 = vmatprep.subr.mxu1 %v3122_v3  ;;  %2702 = vmatprep.subr.mxu0 %v3122_v3 }
  0x17   :  { %2710 = vmatpush3.msra.mxu1 %v3196_v5  ;;  %2703 = vmatpush3.msra.mxu0 %v3315_v40 }
  0x18   :  { %2711 = vmatprep.subr.mxu1 %v3122_v3  ;;  %2704 = vmatprep.mubr.msk.f32.mxu0 %vm3123_vm1, %v3122_v3 }
  0x19   :  { %2712 = vmatpush3.msra.mxu1 %v3206_v7  ;;  %2715 = vmatprep.mubr.msk.f32.mxu1 %vm3123_vm1, %v3122_v3 }
  0x1a   :  { %2713 = vmatprep.subr.mxu1 %v3122_v3  ;;  %2718 = vmatprep.subr.mxu0 %v3122_v3 }
  0x1b   :  { %2714 = vmatpush3.msra.mxu1 %v3214_v8 }
  0x1c   :  { %2729 = vmatprep.subr.mxu1 %v3122_v3 }
  0xc6   :  { %v3226_v9 = vpop.f32.mrf.mxu0 }
  0xc7   :  { %v147_v52 = vadd.f32 %v3226_v9, %v3231_v10 }
  0xc8   :  { %v141_v11 = vpop.f32.mrf.mxu0 }
  0xc9   :  { %v142_v12 = vadd.f32 %v3231_v10, %v141_v11 }
  0xcb   :  { %v269_v13 = vpop.f32.mrf.mxu1 }
  0xcc   :  { %v273_v14 = vadd.f32 %v269_v13, %v142_v12 }
  0xcd   :  { %v2684_v15 = vpop.f32.mrf.mxu1  ;;  %v3356_v46 = vpop.f32.mrf.mxu0 }
  0xce   :  { %2954 = vtanh.f32 %v273_v14  ;;  %v2483_v17 = vmul.f32 -1.442695, %v273_v14 }
  0xcf   :  { %v3358_v47 = vpop.f32.mrf.mxu0 }
  0xd0   :  { %2956 = vpow2.f32 %v2483_v17 }
  0xd1   :  { %v3360_v48 = vpop.f32.mrf.mxu0 }
  0xd3   :  { %v3362_v49 = vpop.f32.mrf.mxu0 }
  0xd4   :  { %v364_v43 = vpop.f32.mrf.mxu1 }
  0xd5   :  { %v3364_v50 = vpop.f32.mrf.mxu0 }
  0xd6   :  { %v2695_v44 = vpop.f32.mrf.mxu1 }
  0xd7   :  { %v3366_v51 = vpop.f32.mrf.mxu0 }
  0xdb   :  { %v2955_v16 = vpop.eup %2954 }
  0xdc   :  { %283 = vrot.lane.b32.xlu0 %v2955_v16, %s3124_s26 }
  0xdd   :  { %v2957_v18 = vpop.eup %2956 }
  0xde   :  { %v277_v19 = vadd.f32 1.0, %v2957_v18 }
  0xe0   :  { %2958 = vrcp.f32 %v277_v19 }
  0xed   :  { %v2959_v20 = vpop.eup %2958 }
  0xee   :  { %v281_v23 = vmul.f32 0.0, %v2959_v20 }
 0x14e   :  { %v284_v21 = vpop.permute.xlu0 %283 }
 0x14f   :  { %v286_v22 = vmul.f32 %v2959_v20, %v284_v21 }
 0x151   :  { %288 = vrot.lane.b32.xlu0 %v286_v22, %s3125_s27 }
 0x1c3   :  { %v289_v24 = vpop.permute.xlu0 %288 }
 0x1c4   :  { %v3236_v25 = vadd.f32 %v289_v24, %v281_v23 }
 0x1c6   :  { %2960 = vtanh.f32 %v3236_v25 }
 0x1d3   :  { %v2961_v39 = vpop.eup %2960 }
 0x1d4   :  { %294 = vrot.lane.b32.xlu1 %v2961_v39, %s3124_s26 }
 0x246   :  { %v295_v41 = vpop.permute.xlu1 %294 }
 0x247   :  { %v297_v42 = vmul.f32 %v2959_v20, %v295_v41 }
 0x249   :  { %369 = vrot.lane.b32.xlu1 %v297_v42, %s3125_s27 }
 0x2bb   :  { %v370_v45 = vpop.permute.xlu1 %369 }
 0x2bc   :  { %2705 = vmatmul.mubr.msk.f32.vlgmr.msra.gmra.mxu0 %vm199_vm2, %v370_v45  ;;  %2716 = vmatmul.mubr.msk.f32.vlgmr.msra.gmra.mxu1 %vm199_vm2, %v370_v45  ;;  %v152_v45 = vadd.f32 %v3231_v10, %v3358_v47 }
 0x2bd   :  { %2730 = vmatpush3.msra.mxu1 %v3242_v26  ;;  %2719 = vmatpush3.msra.mxu0 %v3250_v28 }
 0x2be   :  { %2731 = vmatprep.subr.mxu1 %v3122_v3  ;;  %2720 = vmatprep.subr.mxu0 %v3122_v3 }
 0x2bf   :  { %2732 = vmatpush3.msra.mxu1 %v3265_v31  ;;  %2721 = vmatpush3.msra.mxu0 %v3260_v30 }
 0x2c0   :  { %2733 = vmatprep.subr.mxu1 %v3122_v3  ;;  %2722 = vmatprep.subr.mxu0 %v3122_v3 }
 0x2c1   :  { %2734 = vmatpush3.msra.mxu1 %v3294_v36  ;;  %2723 = vmatpush3.msra.mxu0 %v3277_v33 }
 0x2c2   :  { %2735 = vmatprep.subr.mxu1 %v3122_v3  ;;  %2737 = vmatprep.mubr.msk.f32.mxu1 %vm3123_vm1, %v3122_v3 }
 0x2c3   :  { %2736 = vmatpush3.msra.mxu1 %v3315_v40  ;;  %2724 = vmatprep.subr.mxu0 %v3122_v3 }
 0x2c4   :  { %2725 = vmatpush3.msra.mxu0 %v3289_v35  ;;  %2726 = vmatprep.mubr.msk.f32.mxu0 %vm3123_vm1, %v3122_v3 }
 0x2c5   :  { %2740 = vmatprep.subr.mxu0 %v3122_v3  ;;  %2751 = vmatprep.subr.mxu1 %v3122_v3 }
 0x37c   :  { %v439_v54 = vpop.f32.mrf.mxu0  ;;  %v534_v55 = vpop.f32.mrf.mxu1 }
 0x37d   :  { %v440_v56 = vadd.f32 %v439_v54, %v364_v43  ;;  %v538_v57 = vadd.f32 %v534_v55, %v147_v52 }
 0x37e   :  { %v2706_v58 = vpop.f32.mrf.mxu0  ;;  %v2717_v59 = vpop.f32.mrf.mxu1 }
 0x37f   :  { %v443_v60 = vadd.f32 %v3373_v53, %v440_v56  ;;  %2962 = vtanh.f32 %v538_v57  ;;  %v2487_v63 = vmul.f32 -1.442695, %v538_v57 }
 0x381   :  { %2964 = vtanh.f32 %v443_v60  ;;  %v2485_v0 = vmul.f32 -1.442695, %v443_v60 }
 0x382   :  { %2966 = vpow2.f32 %v2487_v63 }
 0x383   :  { %2968 = vpow2.f32 %v2485_v0 }
 0x38c   :  { %v2963_v61 = vpop.eup %2962 }
 0x38d   :  { %548 = vrot.lane.b32.xlu1 %v2963_v61, %s3124_s26 }
 0x38e   :  { %v2965_v62 = vpop.eup %2964 }
 0x38f   :  { %453 = vrot.lane.b32.xlu0 %v2965_v62, %s3124_s26  ;;  %v2967_v2 = vpop.eup %2966 }
 0x390   :  { %v2969_v4 = vpop.eup %2968  ;;  %v542_v6 = vadd.f32 1.0, %v2967_v2 }
 0x391   :  { %v447_v9 = vadd.f32 1.0, %v2969_v4 }
 0x392   :  { %2970 = vrcp.f32 %v542_v6 }
 0x393   :  { %2972 = vrcp.f32 %v447_v9 }
 0x39f   :  { %v2971_v11 = vpop.eup %2970 }
 0x3a0   :  { %v2973_v14 = vpop.eup %2972  ;;  %v546_v17 = vmul.f32 %v2971_v11, %v3236_v25 }
 0x3a1   :  { %v451_v20 = vmul.f32 0.0, %v2973_v14 }
 0x3ff   :  { %v549_v12 = vpop.permute.xlu1 %548 }
 0x400   :  { %v551_v13 = vmul.f32 %v2971_v11, %v549_v12 }
 0x401   :  { %v454_v15 = vpop.permute.xlu0 %453 }
 0x402   :  { %v456_v16 = vmul.f32 %v2973_v14, %v454_v15  ;;  %553 = vrot.lane.b32.xlu1 %v551_v13, %s3125_s27 }
 0x404   :  { %458 = vrot.lane.b32.xlu0 %v456_v16, %s3125_s27 }
 0x474   :  { %v554_v18 = vpop.permute.xlu1 %553 }
 0x475   :  { %v3381_v19 = vadd.f32 %v554_v18, %v546_v17 }
 0x476   :  { %v459_v21 = vpop.permute.xlu0 %458 }
 0x477   :  { %2974 = vtanh.f32 %v3381_v19  ;;  %v3384_v22 = vadd.f32 %v459_v21, %v451_v20 }
 0x479   :  { %2976 = vtanh.f32 %v3384_v22 }
 0x484   :  { %v2975_v23 = vpop.eup %2974 }
 0x485   :  { %559 = vrot.lane.b32.xlu1 %v2975_v23, %s3124_s26 }
 0x486   :  { %v2977_v24 = vpop.eup %2976 }
 0x487   :  { %464 = vrot.lane.b32.xlu0 %v2977_v24, %s3124_s26 }
 0x4f7   :  { %v560_v27 = vpop.permute.xlu1 %559 }
 0x4f8   :  { %v562_v29 = vmul.f32 %v2971_v11, %v560_v27 }
 0x4f9   :  { %v465_v25 = vpop.permute.xlu0 %464 }
 0x4fa   :  { %v467_v32 = vmul.f32 %v2973_v14, %v465_v25  ;;  %639 = vrot.lane.b32.xlu1 %v562_v29, %s3125_s27 }
 0x4fc   :  { %564 = vrot.lane.b32.xlu0 %v467_v32, %s3125_s27  ;;  %v157_v32 = vadd.f32 %v3356_v46, %v3231_v10 }
 0x56c   :  { %v640_v34 = vpop.permute.xlu1 %639 }
 0x56d   :  { %2738 = vmatmul.mubr.msk.f32.vlgmr.msra.gmra.mxu1 %vm199_vm2, %v640_v34 }
 0x56e   :  { %v565_v37 = vpop.permute.xlu0 %564  ;;  %2752 = vmatpush3.msra.mxu1 %v3250_v28  ;;  %2759 = vmatprep.mubr.msk.f32.mxu1 %vm3123_vm1, %v3122_v3 }
 0x56f   :  { %2727 = vmatmul.mubr.msk.f32.vlgmr.msra.gmra.mxu0 %vm199_vm2, %v565_v37  ;;  %2753 = vmatprep.subr.mxu1 %v3122_v3 }
 0x570   :  { %2741 = vmatpush3.msra.mxu0 %v3183_v1  ;;  %2748 = vmatprep.mubr.msk.f32.mxu0 %vm3123_vm1, %v3122_v3 }
 0x571   :  { %2742 = vmatprep.subr.mxu0 %v3122_v3  ;;  %2754 = vmatpush3.msra.mxu1 %v3260_v30 }
 0x572   :  { %2743 = vmatpush3.msra.mxu0 %v3196_v5  ;;  %2755 = vmatprep.subr.mxu1 %v3122_v3 }
 0x573   :  { %2744 = vmatprep.subr.mxu0 %v3122_v3  ;;  %2756 = vmatpush3.msra.mxu1 %v3277_v33 }
 0x574   :  { %2745 = vmatpush3.msra.mxu0 %v3206_v7  ;;  %2757 = vmatprep.subr.mxu1 %v3122_v3 }
 0x575   :  { %2746 = vmatprep.subr.mxu0 %v3122_v3  ;;  %2758 = vmatpush3.msra.mxu1 %v3289_v35 }
 0x576   :  { %2747 = vmatpush3.msra.mxu0 %v3214_v8  ;;  %2773 = vmatprep.subr.mxu1 %v3122_v3 }
 0x577   :  { %2749 = vmatmul.mubr.msk.f32.vlgmr.msra.gmra.mxu0 %vm199_vm2, %v640_v34  ;;  %2762 = vmatprep.subr.mxu0 %v3122_v3 }
 0x578   :  { %2763 = vmatpush3.msra.mxu0 %v3242_v26  ;;  %2770 = vmatprep.mubr.msk.f32.mxu0 %vm3123_vm1, %v3122_v3 }
 0x579   :  { %2764 = vmatprep.subr.mxu0 %v3122_v3 }
 0x57a   :  { %2765 = vmatpush3.msra.mxu0 %v3265_v31 }
 0x57b   :  { %2766 = vmatprep.subr.mxu0 %v3122_v3 }
 0x57c   :  { %2767 = vmatpush3.msra.mxu0 %v3294_v36 }
 0x57d   :  { %2768 = vmatprep.subr.mxu0 %v3122_v3 }
 0x57e   :  { %2769 = vmatpush3.msra.mxu0 %v3315_v40 }
 0x57f   :  { %2784 = vmatprep.subr.mxu0 %v3122_v3 }
 0x62d   :  { %v709_v38 = vpop.f32.mrf.mxu1 }
 0x62f   :  { %v634_v39 = vpop.f32.mrf.mxu0  ;;  %v2739_v41 = vpop.f32.mrf.mxu1 }
 0x630   :  { %v710_v42 = vadd.f32 %v709_v38, %v634_v39 }
 0x631   :  { %v2728_v43 = vpop.f32.mrf.mxu0 }
 0x632   :  { %v713_v44 = vadd.f32 %v3373_v53, %v710_v42 }
 0x634   :  { %2978 = vtanh.f32 %v713_v44  ;;  %v2490_v58 = vmul.f32 -1.442695, %v713_v44 }
 0x637   :  { %v804_v52 = vpop.f32.mrf.mxu0 }
 0x638   :  { %v808_v54 = vadd.f32 %v804_v52, %v152_v45 }
 0x639   :  { %v2750_v55 = vpop.f32.mrf.mxu0 }
 0x63a   :  { %2980 = vtanh.f32 %v808_v54  ;;  %v2492_v59 = vmul.f32 -1.442695, %v808_v54 }
 0x63b   :  { %2982 = vpow2.f32 %v2490_v58 }
 0x63c   :  { %2984 = vpow2.f32 %v2492_v59 }
 0x641   :  { %v2979_v56 = vpop.eup %2978 }
 0x642   :  { %723 = vrot.lane.b32.xlu0 %v2979_v56, %s3124_s26 }
 0x647   :  { %v2981_v57 = vpop.eup %2980 }
 0x648   :  { %818 = vrot.lane.b32.xlu1 %v2981_v57, %s3124_s26  ;;  %v2983_v60 = vpop.eup %2982 }
 0x649   :  { %v717_v61 = vadd.f32 1.0, %v2983_v60  ;;  %v2985_v62 = vpop.eup %2984 }
 0x64a   :  { %v812_v63 = vadd.f32 1.0, %v2985_v62 }
 0x64b   :  { %2986 = vrcp.f32 %v717_v61 }
 0x64c   :  { %2988 = vrcp.f32 %v812_v63 }
 0x658   :  { %v2987_v47 = vpop.eup %2986 }
 0x659   :  { %v2989_v4 = vpop.eup %2988  ;;  %v721_v11 = vmul.f32 %v2987_v47, %v3384_v22 }
 0x65a   :  { %v816_v14 = vmul.f32 %v2989_v4, %v3381_v19 }
 0x6b4   :  { %v724_v0 = vpop.permute.xlu0 %723 }
 0x6b5   :  { %v726_v2 = vmul.f32 %v2987_v47, %v724_v0 }
 0x6b7   :  { %728 = vrot.lane.b32.xlu0 %v726_v2, %s3125_s27 }
 0x6ba   :  { %v819_v6 = vpop.permute.xlu1 %818 }
 0x6bb   :  { %v821_v9 = vmul.f32 %v2989_v4, %v819_v6 }
 0x6bd   :  { %823 = vrot.lane.b32.xlu1 %v821_v9, %s3125_s27 }
 0x729   :  { %v729_v12 = vpop.permute.xlu0 %728 }
 0x72a   :  { %v3432_v13 = vadd.f32 %v729_v12, %v721_v11 }
 0x72c   :  { %2990 = vtanh.f32 %v3432_v13 }
 0x72f   :  { %v824_v15 = vpop.permute.xlu1 %823 }
 0x730   :  { %v3436_v16 = vadd.f32 %v824_v15, %v816_v14 }
 0x732   :  { %2992 = vtanh.f32 %v3436_v16 }
 0x739   :  { %v2991_v17 = vpop.eup %2990 }
 0x73a   :  { %734 = vrot.lane.b32.xlu0 %v2991_v17, %s3124_s26 }
 0x73f   :  { %v2993_v18 = vpop.eup %2992 }
 0x740   :  { %829 = vrot.lane.b32.xlu1 %v2993_v18, %s3124_s26 }
 0x7ac   :  { %v735_v20 = vpop.permute.xlu0 %734 }
 0x7ad   :  { %v737_v21 = vmul.f32 %v2987_v47, %v735_v20 }
 0x7af   :  { %834 = vrot.lane.b32.xlu0 %v737_v21, %s3125_s27 }
 0x7b2   :  { %v830_v22 = vpop.permute.xlu1 %829 }
 0x7b3   :  { %v832_v23 = vmul.f32 %v2989_v4, %v830_v22 }
 0x7b5   :  { %909 = vrot.lane.b32.xlu1 %v832_v23, %s3125_s27 }
 0x821   :  { %v835_v19 = vpop.permute.xlu0 %834 }
 0x822   :  { %2760 = vmatmul.mubr.msk.f32.vlgmr.msra.gmra.mxu1 %vm199_vm2, %v835_v19 }
 0x823   :  { %2774 = vmatpush3.msra.mxu1 %v3183_v1  ;;  %2781 = vmatprep.mubr.msk.f32.mxu1 %vm3123_vm1, %v3122_v3 }
 0x824   :  { %2775 = vmatprep.subr.mxu1 %v3122_v3 }
 0x825   :  { %2776 = vmatpush3.msra.mxu1 %v3196_v5 }
 0x826   :  { %2777 = vmatprep.subr.mxu1 %v3122_v3 }
 0x827   :  { %2778 = vmatpush3.msra.mxu1 %v3206_v7  ;;  %v910_v24 = vpop.permute.xlu1 %909 }
 0x828   :  { %2771 = vmatmul.mubr.msk.f32.vlgmr.msra.gmra.mxu0 %vm199_vm2, %v910_v24  ;;  %2779 = vmatprep.subr.mxu1 %v3122_v3 }
 0x829   :  { %2780 = vmatpush3.msra.mxu1 %v3214_v8  ;;  %2785 = vmatpush3.msra.mxu0 %v3250_v28 }
 0x82a   :  { %2782 = vmatmul.mubr.msk.f32.vlgmr.msra.gmra.mxu1 %vm199_vm2, %v910_v24  ;;  %2795 = vmatprep.subr.mxu1 %v3122_v3  ;;  %v162_v24 = vadd.f32 %v3231_v10, %v3362_v49 }
 0x82b   :  { %2786 = vmatprep.subr.mxu0 %v3122_v3  ;;  %2796 = vmatpush3.msra.mxu1 %v3242_v26 }
 0x82c   :  { %2787 = vmatpush3.msra.mxu0 %v3260_v30  ;;  %2797 = vmatprep.subr.mxu1 %v3122_v3 }
 0x82d   :  { %2788 = vmatprep.subr.mxu0 %v3122_v3  ;;  %2798 = vmatpush3.msra.mxu1 %v3265_v31 }
 0x82e   :  { %2789 = vmatpush3.msra.mxu0 %v3277_v33  ;;  %2799 = vmatprep.subr.mxu1 %v3122_v3 }
 0x82f   :  { %2790 = vmatprep.subr.mxu0 %v3122_v3  ;;  %2800 = vmatpush3.msra.mxu1 %v3294_v36 }
 0x830   :  { %2791 = vmatpush3.msra.mxu0 %v3289_v35  ;;  %2801 = vmatprep.subr.mxu1 %v3122_v3 }
 0x831   :  { %2802 = vmatpush3.msra.mxu1 %v3315_v40  ;;  %2803 = vmatprep.mubr.msk.f32.mxu1 %vm3123_vm1, %v3122_v3 }
 0x832   :  { %2792 = vmatprep.mubr.msk.f32.mxu0 %vm3123_vm1, %v3122_v3  ;;  %2806 = vmatprep.subr.mxu0 %v3122_v3 }
 0x833   :  { %2817 = vmatprep.subr.mxu1 %v3122_v3 }
 0x8e2   :  { %v904_v27 = vpop.f32.mrf.mxu1 }
 0x8e4   :  { %v2761_v29 = vpop.f32.mrf.mxu1 }
 0x8e8   :  { %v979_v25 = vpop.f32.mrf.mxu0 }
 0x8e9   :  { %v980_v34 = vadd.f32 %v979_v25, %v904_v27 }
 0x8ea   :  { %v2772_v37 = vpop.f32.mrf.mxu0  ;;  %v1074_v38 = vpop.f32.mrf.mxu1 }
 0x8eb   :  { %v983_v39 = vadd.f32 %v3373_v53, %v980_v34  ;;  %v1078_v41 = vadd.f32 %v1074_v38, %v157_v32 }
 0x8ec   :  { %v2783_v42 = vpop.f32.mrf.mxu1 }
 0x8ed   :  { %2994 = vtanh.f32 %v983_v39  ;;  %v2495_v45 = vmul.f32 -1.442695, %v983_v39  ;;  %v2497_v52 = vmul.f32 -1.442695, %v1078_v41 }
 0x8ee   :  { %2996 = vtanh.f32 %v1078_v41 }
 0x8ef   :  { %2998 = vpow2.f32 %v2495_v45 }
 0x8f0   :  { %3000 = vpow2.f32 %v2497_v52 }
 0x8fa   :  { %v2995_v43 = vpop.eup %2994 }
 0x8fb   :  { %v2997_v44 = vpop.eup %2996  ;;  %993 = vrot.lane.b32.xlu0 %v2995_v43, %s3124_s26 }
 0x8fc   :  { %1088 = vrot.lane.b32.xlu1 %v2997_v44, %s3124_s26  ;;  %v2999_v46 = vpop.eup %2998 }
 0x8fd   :  { %v3001_v54 = vpop.eup %3000  ;;  %v987_v55 = vadd.f32 1.0, %v2999_v46 }
 0x8fe   :  { %v1082_v56 = vadd.f32 1.0, %v3001_v54 }
 0x8ff   :  { %3002 = vrcp.f32 %v987_v55 }
 0x900   :  { %3004 = vrcp.f32 %v1082_v56 }
 0x90c   :  { %v3003_v57 = vpop.eup %3002 }
 0x90d   :  { %v3005_v59 = vpop.eup %3004  ;;  %v991_v63 = vmul.f32 %v3003_v57, %v3432_v13 }
 0x90e   :  { %v1086_v47 = vmul.f32 %v3005_v59, %v3436_v16 }
 0x96d   :  { %v994_v58 = vpop.permute.xlu0 %993 }
 0x96e   :  { %v1089_v60 = vpop.permute.xlu1 %1088  ;;  %v996_v61 = vmul.f32 %v3003_v57, %v994_v58 }
 0x96f   :  { %v1091_v62 = vmul.f32 %v3005_v59, %v1089_v60 }
 0x970   :  { %998 = vrot.lane.b32.xlu0 %v996_v61, %s3125_s27 }
 0x971   :  { %1093 = vrot.lane.b32.xlu1 %v1091_v62, %s3125_s27 }
 0x9e2   :  { %v999_v0 = vpop.permute.xlu0 %998 }
 0x9e3   :  { %v1094_v2 = vpop.permute.xlu1 %1093  ;;  %v3485_v4 = vadd.f32 %v999_v0, %v991_v63 }
 0x9e4   :  { %v3487_v6 = vadd.f32 %v1094_v2, %v1086_v47 }
 0x9e5   :  { %3006 = vtanh.f32 %v3485_v4 }
 0x9e6   :  { %3008 = vtanh.f32 %v3487_v6 }
 0x9f2   :  { %v3007_v9 = vpop.eup %3006 }
 0x9f3   :  { %v3009_v11 = vpop.eup %3008  ;;  %1004 = vrot.lane.b32.xlu0 %v3007_v9, %s3124_s26  ;;  %v167_v9 = vadd.f32 %v3360_v48, %v3231_v10 }
 0x9f4   :  { %1099 = vrot.lane.b32.xlu1 %v3009_v11, %s3124_s26 }
 0xa65   :  { %v1005_v12 = vpop.permute.xlu0 %1004 }
 0xa66   :  { %v1100_v13 = vpop.permute.xlu1 %1099  ;;  %v1007_v14 = vmul.f32 %v3003_v57, %v1005_v12 }
 0xa67   :  { %v1102_v15 = vmul.f32 %v3005_v59, %v1100_v13 }
 0xa68   :  { %1104 = vrot.lane.b32.xlu0 %v1007_v14, %s3125_s27 }
 0xa69   :  { %1179 = vrot.lane.b32.xlu1 %v1102_v15, %s3125_s27 }
 0xada   :  { %v1105_v16 = vpop.permute.xlu0 %1104 }
 0xadb   :  { %v1180_v17 = vpop.permute.xlu1 %1179  ;;  %2793 = vmatmul.mubr.msk.f32.vlgmr.msra.gmra.mxu0 %vm199_vm2, %v1105_v16 }
 0xadc   :  { %2804 = vmatmul.mubr.msk.f32.vlgmr.msra.gmra.mxu1 %vm199_vm2, %v1180_v17  ;;  %2807 = vmatpush3.msra.mxu0 %v3183_v1 }
 0xadd   :  { %2808 = vmatprep.subr.mxu0 %v3122_v3  ;;  %2814 = vmatprep.mubr.msk.f32.mxu0 %vm3123_vm1, %v3122_v3 }
 0xade   :  { %2809 = vmatpush3.msra.mxu0 %v3196_v5  ;;  %2818 = vmatpush3.msra.mxu1 %v3250_v28 }
 0xadf   :  { %2810 = vmatprep.subr.mxu0 %v3122_v3  ;;  %2819 = vmatprep.subr.mxu1 %v3122_v3 }
 0xae0   :  { %2811 = vmatpush3.msra.mxu0 %v3206_v7  ;;  %2820 = vmatpush3.msra.mxu1 %v3260_v30 }
 0xae1   :  { %2812 = vmatprep.subr.mxu0 %v3122_v3  ;;  %2821 = vmatprep.subr.mxu1 %v3122_v3 }
 0xae2   :  { %2813 = vmatpush3.msra.mxu0 %v3214_v8  ;;  %2822 = vmatpush3.msra.mxu1 %v3277_v33 }
 0xae3   :  { %2815 = vmatmul.mubr.msk.f32.vlgmr.msra.gmra.mxu0 %vm199_vm2, %v1180_v17  ;;  %2823 = vmatprep.subr.mxu1 %v3122_v3 }
 0xae4   :  { %2828 = vmatprep.subr.mxu0 %v3122_v3  ;;  %2824 = vmatpush3.msra.mxu1 %v3289_v35 }
 0xae5   :  { %2829 = vmatpush3.msra.mxu0 %v3242_v26  ;;  %2825 = vmatprep.mubr.msk.f32.mxu1 %vm3123_vm1, %v3122_v3 }
 0xae6   :  { %2830 = vmatprep.subr.mxu0 %v3122_v3  ;;  %2839 = vmatprep.subr.mxu1 %v3122_v3 }
 0xae7   :  { %2831 = vmatpush3.msra.mxu0 %v3265_v31  ;;  %2836 = vmatprep.mubr.msk.f32.mxu0 %vm3123_vm1, %v3122_v3 }
 0xae8   :  { %2832 = vmatprep.subr.mxu0 %v3122_v3 }
 0xae9   :  { %2833 = vmatpush3.msra.mxu0 %v3294_v36 }
 0xaea   :  { %2834 = vmatprep.subr.mxu0 %v3122_v3 }
 0xaeb   :  { %2835 = vmatpush3.msra.mxu0 %v3315_v40 }
 0xaec   :  { %2850 = vmatprep.subr.mxu0 %v3122_v3 }
 0xb9b   :  { %v1174_v18 = vpop.f32.mrf.mxu0 }
 0xb9c   :  { %v1249_v20 = vpop.f32.mrf.mxu1 }
 0xb9d   :  { %v1250_v21 = vadd.f32 %v1249_v20, %v1174_v18  ;;  %v2794_v22 = vpop.f32.mrf.mxu0 }
 0xb9e   :  { %v2805_v23 = vpop.f32.mrf.mxu1 }
 0xb9f   :  { %v1253_v19 = vadd.f32 %v3373_v53, %v1250_v21 }
 0xba1   :  { %3010 = vtanh.f32 %v1253_v19  ;;  %v2500_v37 = vmul.f32 -1.442695, %v1253_v19 }
 0xba3   :  { %v1344_v27 = vpop.f32.mrf.mxu0 }
 0xba4   :  { %v1348_v29 = vadd.f32 %v1344_v27, %v162_v24 }
 0xba5   :  { %v2816_v25 = vpop.f32.mrf.mxu0 }
 0xba6   :  { %3012 = vtanh.f32 %v1348_v29  ;;  %v2502_v38 = vmul.f32 -1.442695, %v1348_v29 }
 0xba7   :  { %3014 = vpow2.f32 %v2500_v37 }
 0xba8   :  { %3016 = vpow2.f32 %v2502_v38 }
 0xbae   :  { %v3011_v32 = vpop.eup %3010 }
 0xbaf   :  { %1263 = vrot.lane.b32.xlu0 %v3011_v32, %s3124_s26 }
 0xbb3   :  { %v3013_v34 = vpop.eup %3012 }
 0xbb4   :  { %1358 = vrot.lane.b32.xlu1 %v3013_v34, %s3124_s26  ;;  %v3015_v39 = vpop.eup %3014 }
 0xbb5   :  { %v1257_v41 = vadd.f32 1.0, %v3015_v39  ;;  %v3017_v42 = vpop.eup %3016 }
 0xbb6   :  { %v1352_v43 = vadd.f32 1.0, %v3017_v42 }
 0xbb7   :  { %3018 = vrcp.f32 %v1257_v41 }
 0xbb8   :  { %3020 = vrcp.f32 %v1352_v43 }
 0xbc4   :  { %v3019_v49 = vpop.eup %3018 }
 0xbc5   :  { %v3021_v52 = vpop.eup %3020  ;;  %v1261_v55 = vmul.f32 %v3019_v49, %v3485_v4 }
 0xbc6   :  { %v1356_v58 = vmul.f32 %v3021_v52, %v3487_v6 }
 0xc21   :  { %v1264_v44 = vpop.permute.xlu0 %1263 }
 0xc22   :  { %v1266_v45 = vmul.f32 %v3019_v49, %v1264_v44 }
 0xc24   :  { %1268 = vrot.lane.b32.xlu0 %v1266_v45, %s3125_s27 }
 0xc26   :  { %v1359_v46 = vpop.permute.xlu1 %1358 }
 0xc27   :  { %v1361_v54 = vmul.f32 %v3021_v52, %v1359_v46 }
 0xc29   :  { %1363 = vrot.lane.b32.xlu1 %v1361_v54, %s3125_s27 }
 0xc96   :  { %v1269_v56 = vpop.permute.xlu0 %1268 }
 0xc97   :  { %v3536_v57 = vadd.f32 %v1269_v56, %v1261_v55  ;;  %v3604_v55 = vld [vmem:[%s3775_s2 + $0x18] sm:$0xff]  ;;  %v3613_v56 = vld [vmem:[%s3775_s2 + $0x10] sm:$0xff] }
 0xc99   :  { %3022 = vtanh.f32 %v3536_v57 }
 0xc9b   :  { %v1364_v59 = vpop.permute.xlu1 %1363 }
 0xc9c   :  { %v3540_v60 = vadd.f32 %v1364_v59, %v1356_v58  ;;  %v3656_v59 = vld [vmem:[%s3776_s3] ss:$0 sm:$0xff] }
 0xc9e   :  { %3024 = vtanh.f32 %v3540_v60 }
 0xca6   :  { %v3023_v61 = vpop.eup %3022 }
 0xca7   :  { %1274 = vrot.lane.b32.xlu0 %v3023_v61, %s3124_s26 }
 0xcab   :  { %v3025_v62 = vpop.eup %3024 }
 0xcac   :  { %1369 = vrot.lane.b32.xlu1 %v3025_v62, %s3124_s26 }
 0xd19   :  { %v1275_v63 = vpop.permute.xlu0 %1274 }
 0xd1a   :  { %v1277_v47 = vmul.f32 %v3019_v49, %v1275_v63 }
 0xd1c   :  { %1374 = vrot.lane.b32.xlu0 %v1277_v47, %s3125_s27 }
 0xd1e   :  { %v1370_v0 = vpop.permute.xlu1 %1369 }
 0xd1f   :  { %v1372_v2 = vmul.f32 %v3021_v52, %v1370_v0 }
 0xd21   :  { %1449 = vrot.lane.b32.xlu1 %v1372_v2, %s3125_s27 }
 0xd8e   :  { %v1375_v4 = vpop.permute.xlu0 %1374 }
 0xd8f   :  { %2826 = vmatmul.mubr.msk.f32.vlgmr.msra.gmra.mxu1 %vm199_vm2, %v1375_v4 }
 0xd90   :  { %2840 = vmatpush3.msra.mxu1 %v3183_v1  ;;  %2847 = vmatprep.mubr.msk.f32.mxu1 %vm3123_vm1, %v3122_v3 }
 0xd91   :  { %2841 = vmatprep.subr.mxu1 %v3122_v3 }
 0xd92   :  { %2842 = vmatpush3.msra.mxu1 %v3196_v5 }
 0xd93   :  { %2843 = vmatprep.subr.mxu1 %v3122_v3  ;;  %v1450_v6 = vpop.permute.xlu1 %1449 }
 0xd94   :  { %2844 = vmatpush3.msra.mxu1 %v3206_v7  ;;  %2837 = vmatmul.mubr.msk.f32.vlgmr.msra.gmra.mxu0 %vm199_vm2, %v1450_v6 }
 0xd95   :  { %2845 = vmatprep.subr.mxu1 %v3122_v3  ;;  %2851 = vmatpush3.msra.mxu0 %v3250_v28 }
 0xd96   :  { %2846 = vmatpush3.msra.mxu1 %v3214_v8  ;;  %2852 = vmatprep.subr.mxu0 %v3122_v3 }
 0xd97   :  { %2848 = vmatmul.mubr.msk.f32.vlgmr.msra.gmra.mxu1 %vm199_vm2, %v1450_v6  ;;  %2861 = vmatprep.subr.mxu1 %v3122_v3 }
 0xd98   :  { %2862 = vmatpush3.msra.mxu1 %v3242_v26  ;;  %2853 = vmatpush3.msra.mxu0 %v3260_v30 }
 0xd99   :  { %2863 = vmatprep.subr.mxu1 %v3122_v3  ;;  %2854 = vmatprep.subr.mxu0 %v3122_v3 }
 0xd9a   :  { %2864 = vmatpush3.msra.mxu1 %v3265_v31  ;;  %2855 = vmatpush3.msra.mxu0 %v3277_v33 }
 0xd9b   :  { %2865 = vmatprep.subr.mxu1 %v3122_v3  ;;  %2856 = vmatprep.subr.mxu0 %v3122_v3 }
 0xd9c   :  { %2866 = vmatpush3.msra.mxu1 %v3294_v36  ;;  %2857 = vmatpush3.msra.mxu0 %v3289_v35 }
 0xd9d   :  { %2867 = vmatprep.subr.mxu1 %v3122_v3  ;;  %2869 = vmatprep.mubr.msk.f32.mxu1 %vm3123_vm1, %v3122_v3 }
 0xd9e   :  { %2868 = vmatpush3.msra.mxu1 %v3315_v40  ;;  %2858 = vmatprep.mubr.msk.f32.mxu0 %vm3123_vm1, %v3122_v3 }
 0xd9f   :  { %2872 = vmatprep.subr.mxu0 %v3122_v3  ;;  %2883 = vmatprep.subr.mxu1 %v3122_v3 }
 0xe4f   :  { %v1444_v1 = vpop.f32.mrf.mxu1 }
 0xe51   :  { %v2827_v5 = vpop.f32.mrf.mxu1 }
 0xe54   :  { %v1519_v7 = vpop.f32.mrf.mxu0 }
 0xe55   :  { %v1520_v8 = vadd.f32 %v1519_v7, %v1444_v1 }
 0xe56   :  { %v2838_v11 = vpop.f32.mrf.mxu0 }
 0xe57   :  { %v1523_v12 = vadd.f32 %v3373_v53, %v1520_v8  ;;  %v1614_v13 = vpop.f32.mrf.mxu1 }
 0xe58   :  { %v1618_v14 = vadd.f32 %v1614_v13, %v167_v9 }
 0xe59   :  { %3026 = vtanh.f32 %v1523_v12  ;;  %v2849_v15 = vpop.f32.mrf.mxu1  ;;  %v2505_v18 = vmul.f32 -1.442695, %v1523_v12 }
 0xe5a   :  { %3028 = vtanh.f32 %v1618_v14  ;;  %v2507_v20 = vmul.f32 -1.442695, %v1618_v14 }
 0xe5b   :  { %3030 = vpow2.f32 %v2505_v18 }
 0xe5c   :  { %3032 = vpow2.f32 %v2507_v20 }
 0xe66   :  { %v3027_v16 = vpop.eup %3026 }
 0xe67   :  { %v3029_v17 = vpop.eup %3028  ;;  %1533 = vrot.lane.b32.xlu0 %v3027_v16, %s3124_s26 }
 0xe68   :  { %1628 = vrot.lane.b32.xlu1 %v3029_v17, %s3124_s26  ;;  %v3031_v21 = vpop.eup %3030 }
 0xe69   :  { %v3033_v10 = vpop.eup %3032  ;;  %v1527_v48 = vadd.f32 1.0, %v3031_v21 }
 0xe6a   :  { %v1622_v22 = vadd.f32 1.0, %v3033_v10 }
 0xe6b   :  { %3034 = vrcp.f32 %v1527_v48 }
 0xe6c   :  { %3036 = vrcp.f32 %v1622_v22 }
 0xe78   :  { %v3035_v23 = vpop.eup %3034 }
 0xe79   :  { %v3037_v24 = vpop.eup %3036  ;;  %v1531_v32 = vmul.f32 %v3035_v23, %v3536_v57  ;;  %v3622_v57 = vld [vmem:[%s3775_s2 + $0x8] sm:$0xff] }
 0xe7a   :  { %v1626_v34 = vmul.f32 %v3037_v24, %v3540_v60 }
 0xed9   :  { %v1534_v19 = vpop.permute.xlu0 %1533 }
 0xeda   :  { %v1629_v27 = vpop.permute.xlu1 %1628  ;;  %v1536_v29 = vmul.f32 %v3035_v23, %v1534_v19 }
 0xedb   :  { %v1631_v25 = vmul.f32 %v3037_v24, %v1629_v27  ;;  %v3092_v27 = vld [vmem:[%s3777_s4 + $0x18] sm:$0xff] }
 0xedc   :  { %1538 = vrot.lane.b32.xlu0 %v1536_v29, %s3125_s27  ;;  %v3093_v29 = vld [vmem:[%s3778_s5 + $0x10] sm:$0xff] }
 0xedd   :  { %1633 = vrot.lane.b32.xlu1 %v1631_v25, %s3125_s27  ;;  %v3094_v25 = vld [vmem:[%s3777_s4 + $0x10] sm:$0xff] }
 0xf4e   :  { %v1539_v37 = vpop.permute.xlu0 %1538 }
 0xf4f   :  { %v1634_v38 = vpop.permute.xlu1 %1633  ;;  %v3589_v39 = vadd.f32 %v1539_v37, %v1531_v32  ;;  %v3095_v32 = vld [vmem:[%s3778_s5 + $0x8] sm:$0xff]  ;;  %v3097_v37 = vld [vmem:[%s3778_s5] sm:$0xff] }
 0xf50   :  { %v3591_v41 = vadd.f32 %v1634_v38, %v1626_v34  ;;  %v3096_v34 = vld [vmem:[%s3777_s4 + $0x8] sm:$0xff]  ;;  %v3098_v38 = vld [vmem:[%s3777_s4] sm:$0xff] }
 0xf51   :  { %3038 = vtanh.f32 %v3589_v39 }
 0xf52   :  { %3040 = vtanh.f32 %v3591_v41 }
 0xf5e   :  { %v3039_v42 = vpop.eup %3038 }
 0xf5f   :  { %v3041_v43 = vpop.eup %3040  ;;  %1544 = vrot.lane.b32.xlu0 %v3039_v42, %s3124_s26 }
 0xf60   :  { %1639 = vrot.lane.b32.xlu1 %v3041_v43, %s3124_s26 }
 0xfd1   :  { %v1545_v49 = vpop.permute.xlu0 %1544 }
 0xfd2   :  { %v1640_v44 = vpop.permute.xlu1 %1639  ;;  %v1547_v45 = vmul.f32 %v3035_v23, %v1545_v49  ;;  %v177_v49 = vadd.f32 %v3656_v59, %v3364_v50 }
 0xfd3   :  { %v1642_v52 = vmul.f32 %v3037_v24, %v1640_v44  ;;  %v3091_v24 = vld [vmem:[%s3778_s5 + $0x18] sm:$0xff] }
 0xfd4   :  { %1644 = vrot.lane.b32.xlu0 %v1547_v45, %s3125_s27 }
 0xfd5   :  { %1719 = vrot.lane.b32.xlu1 %v1642_v52, %s3125_s27 }
0x1046   :  { %v1645_v46 = vpop.permute.xlu0 %1644 }
0x1047   :  { %v1720_v54 = vpop.permute.xlu1 %1719  ;;  %2859 = vmatmul.mubr.msk.f32.vlgmr.msra.gmra.mxu0 %vm199_vm2, %v1645_v46 }
0x1048   :  { %2870 = vmatmul.mubr.msk.f32.vlgmr.msra.gmra.mxu1 %vm199_vm2, %v1720_v54  ;;  %2873 = vmatpush3.msra.mxu0 %v3604_v55 }
0x1049   :  { %2874 = vmatprep.subr.mxu0 %v3122_v3  ;;  %2880 = vmatprep.mubr.msk.f32.mxu0 %vm3123_vm1, %v3122_v3 }
0x104a   :  { %2875 = vmatpush3.msra.mxu0 %v3613_v56  ;;  %2884 = vmatpush3.msra.mxu1 %v3250_v28  ;;  %v3631_v28 = vld [vmem:[%s3775_s2] sm:$0xff] }
0x104b   :  { %2876 = vmatprep.subr.mxu0 %v3122_v3  ;;  %2885 = vmatprep.subr.mxu1 %v3122_v3 }
0x104c   :  { %2877 = vmatpush3.msra.mxu0 %v3622_v57  ;;  %2886 = vmatpush3.msra.mxu1 %v3260_v30 }
0x104d   :  { %2878 = vmatprep.subr.mxu0 %v3122_v3  ;;  %2887 = vmatprep.subr.mxu1 %v3122_v3 }
0x104e   :  { %2879 = vmatpush3.msra.mxu0 %v3631_v28  ;;  %2888 = vmatpush3.msra.mxu1 %v3277_v33 }
0x104f   :  { %2881 = vmatmul.mubr.msk.f32.vlgmr.msra.gmra.mxu0 %vm199_vm2, %v1720_v54  ;;  %2889 = vmatprep.subr.mxu1 %v3122_v3 }
0x1050   :  { %2894 = vmatprep.subr.mxu0 %v3122_v3  ;;  %2890 = vmatpush3.msra.mxu1 %v3289_v35 }
0x1051   :  { %2895 = vmatpush3.msra.mxu0 %v3242_v26  ;;  %2891 = vmatprep.mubr.msk.f32.mxu1 %vm3123_vm1, %v3122_v3 }
0x1052   :  { %2896 = vmatprep.subr.mxu0 %v3122_v3  ;;  %2905 = vmatprep.subr.mxu1 %v3122_v3 }
0x1053   :  { %2897 = vmatpush3.msra.mxu0 %v3265_v31  ;;  %2902 = vmatprep.mubr.msk.f32.mxu0 %vm3123_vm1, %v3122_v3 }
0x1054   :  { %2898 = vmatprep.subr.mxu0 %v3122_v3 }
0x1055   :  { %2899 = vmatpush3.msra.mxu0 %v3294_v36  ;;  %v172_v36 = vadd.f32 %v3656_v59, %v3366_v51 }
0x1056   :  { %2900 = vmatprep.subr.mxu0 %v3122_v3 }
0x1057   :  { %2901 = vmatpush3.msra.mxu0 %v3315_v40 }
0x1058   :  { %2916 = vmatprep.subr.mxu0 %v3122_v3 }
0x1107   :  { %v1714_v26 = vpop.f32.mrf.mxu0 }
0x1108   :  { %v1789_v30 = vpop.f32.mrf.mxu1 }
0x1109   :  { %v1790_v33 = vadd.f32 %v1789_v30, %v1714_v26  ;;  %v2860_v35 = vpop.f32.mrf.mxu0 }
0x110a   :  { %v2871_v58 = vpop.f32.mrf.mxu1 }
0x110b   :  { %v1793_v31 = vadd.f32 %v3373_v53, %v1790_v33 }
0x110d   :  { %3042 = vtanh.f32 %v1793_v31  ;;  %v2510_v47 = vmul.f32 -1.442695, %v1793_v31 }
0x110f   :  { %v1884_v60 = vpop.f32.mrf.mxu0 }
0x1110   :  { %v1888_v40 = vadd.f32 %v1884_v60, %v172_v36 }
0x1111   :  { %v2882_v61 = vpop.f32.mrf.mxu0 }
0x1112   :  { %3044 = vtanh.f32 %v1888_v40  ;;  %v2512_v0 = vmul.f32 -1.442695, %v1888_v40 }
0x1113   :  { %3046 = vpow2.f32 %v2510_v47 }
0x1114   :  { %3048 = vpow2.f32 %v2512_v0 }
0x111a   :  { %v3043_v62 = vpop.eup %3042 }
0x111b   :  { %1803 = vrot.lane.b32.xlu0 %v3043_v62, %s3124_s26 }
0x111f   :  { %v3045_v63 = vpop.eup %3044 }
0x1120   :  { %1898 = vrot.lane.b32.xlu1 %v3045_v63, %s3124_s26  ;;  %v3047_v2 = vpop.eup %3046 }
0x1121   :  { %v1797_v4 = vadd.f32 1.0, %v3047_v2  ;;  %v3049_v6 = vpop.eup %3048 }
0x1122   :  { %v1892_v1 = vadd.f32 1.0, %v3049_v6 }
0x1123   :  { %3050 = vrcp.f32 %v1797_v4 }
0x1124   :  { %3052 = vrcp.f32 %v1892_v1 }
0x1130   :  { %v3051_v51 = vpop.eup %3050 }
0x1131   :  { %v3053_v8 = vpop.eup %3052  ;;  %v1801_v12 = vmul.f32 %v3051_v51, %v3589_v39 }
0x1132   :  { %v1896_v15 = vmul.f32 %v3053_v8, %v3591_v41 }
0x118d   :  { %v1804_v5 = vpop.permute.xlu0 %1803 }
0x118e   :  { %v1806_v7 = vmul.f32 %v3051_v51, %v1804_v5 }
0x1190   :  { %1808 = vrot.lane.b32.xlu0 %v1806_v7, %s3125_s27 }
0x1192   :  { %v1899_v9 = vpop.permute.xlu1 %1898 }
0x1193   :  { %v1901_v11 = vmul.f32 %v3053_v8, %v1899_v9 }
0x1195   :  { %1903 = vrot.lane.b32.xlu1 %v1901_v11, %s3125_s27 }
0x1202   :  { %v1809_v13 = vpop.permute.xlu0 %1808 }
0x1203   :  { %v3665_v14 = vadd.f32 %v1809_v13, %v1801_v12 }
0x1205   :  { %3054 = vtanh.f32 %v3665_v14 }
0x1207   :  { %v1904_v16 = vpop.permute.xlu1 %1903 }
0x1208   :  { %v3669_v17 = vadd.f32 %v1904_v16, %v1896_v15 }
0x120a   :  { %3056 = vtanh.f32 %v3669_v17 }
0x1212   :  { %v3055_v18 = vpop.eup %3054 }
0x1213   :  { %1814 = vrot.lane.b32.xlu0 %v3055_v18, %s3124_s26 }
0x1217   :  { %v3057_v20 = vpop.eup %3056 }
0x1218   :  { %1909 = vrot.lane.b32.xlu1 %v3057_v20, %s3124_s26 }
0x1285   :  { %v1815_v21 = vpop.permute.xlu0 %1814 }
0x1286   :  { %v1817_v10 = vmul.f32 %v3051_v51, %v1815_v21 }
0x1288   :  { %1914 = vrot.lane.b32.xlu0 %v1817_v10, %s3125_s27 }
0x128a   :  { %v1910_v48 = vpop.permute.xlu1 %1909 }
0x128b   :  { %v1912_v22 = vmul.f32 %v3053_v8, %v1910_v48 }
0x128d   :  { %1989 = vrot.lane.b32.xlu1 %v1912_v22, %s3125_s27 }
0x12fa   :  { %v1915_v23 = vpop.permute.xlu0 %1914 }
0x12fb   :  { %2892 = vmatmul.mubr.msk.f32.vlgmr.msra.gmra.mxu1 %vm199_vm2, %v1915_v23 }
0x12fc   :  { %2906 = vmatpush3.msra.mxu1 %v3604_v55  ;;  %2913 = vmatprep.mubr.msk.f32.mxu1 %vm3123_vm1, %v3122_v3 }
0x12fd   :  { %2907 = vmatprep.subr.mxu1 %v3122_v3 }
0x12fe   :  { %2908 = vmatpush3.msra.mxu1 %v3613_v56 }
0x12ff   :  { %2909 = vmatprep.subr.mxu1 %v3122_v3  ;;  %v1990_v19 = vpop.permute.xlu1 %1989 }
0x1300   :  { %2910 = vmatpush3.msra.mxu1 %v3622_v57  ;;  %2903 = vmatmul.mubr.msk.f32.vlgmr.msra.gmra.mxu0 %vm199_vm2, %v1990_v19 }
0x1301   :  { %2911 = vmatprep.subr.mxu1 %v3122_v3  ;;  %2917 = vmatpush3.msra.mxu0 %v3091_v24  ;;  %v2361_v24 = vld [vmem:[%s3780_s7 + $0x18] sm:$0xff] }
0x1302   :  { %2912 = vmatpush3.msra.mxu1 %v3631_v28  ;;  %2918 = vmatprep.subr.mxu0 %v3122_v3 }
0x1303   :  { %2914 = vmatmul.mubr.msk.f32.vlgmr.msra.gmra.mxu1 %vm199_vm2, %v1990_v19  ;;  %2927 = vmatprep.subr.mxu1 %v3122_v3 }
0x1304   :  { %2928 = vmatpush3.msra.mxu1 %v3092_v27  ;;  %2919 = vmatpush3.msra.mxu0 %v3093_v29  ;;  %v2360_v27 = vld [vmem:[%s3780_s7 + $0x10] sm:$0xff]  ;;  %v2359_v29 = vld [vmem:[%s3780_s7 + $0x8] sm:$0xff] }
0x1305   :  { %2929 = vmatprep.subr.mxu1 %v3122_v3  ;;  %2920 = vmatprep.subr.mxu0 %v3122_v3 }
0x1306   :  { %2930 = vmatpush3.msra.mxu1 %v3094_v25  ;;  %2921 = vmatpush3.msra.mxu0 %v3095_v32  ;;  %v2358_v25 = vld [vmem:[%s3780_s7] sm:$0xff]  ;;  %s3126_s7 = smov [#allocation2]  }
0x1307   :  { %2931 = vmatprep.subr.mxu1 %v3122_v3  ;;  %2922 = vmatprep.subr.mxu0 %v3122_v3 }
0x1308   :  { %2932 = vmatpush3.msra.mxu1 %v3096_v34  ;;  %2935 = vmatprep.mubr.msk.f32.mxu1 %vm3123_vm1, %v3122_v3 }
0x1309   :  { %2933 = vmatprep.subr.mxu1 %v3122_v3  ;;  %2923 = vmatpush3.msra.mxu0 %v3097_v37 }
0x130a   :  { %2934 = vmatpush3.msra.mxu1 %v3098_v38  ;;  %2924 = vmatprep.mubr.msk.f32.mxu0 %vm3123_vm1, %v3122_v3 }
0x130b   :  { %2938 = vmatprep.subr.mxu0 %v3122_v3 }
0x13bb   :  { %v1984_v39 = vpop.f32.mrf.mxu1 }
0x13bd   :  { %v2893_v41 = vpop.f32.mrf.mxu1 }
0x13c0   :  { %v2059_v42 = vpop.f32.mrf.mxu0 }
0x13c1   :  { %v2060_v43 = vadd.f32 %v2059_v42, %v1984_v39  ;;  %v2521_v39 = vld [vmem:[%s3781_s8] ss:$0 sm:$0xff]  ;;  %s2465_s8 = sshll.u32 %s3126_s7, 4  ;;  %s2466_s8 = int_to_ptr.vmem [resolvable:$true] %s2465_s8 }
0x13c2   :  { %v2904_v44 = vpop.f32.mrf.mxu0  ;;  %p3105_p1 = scmp.lt.s32.totalorder %s2466_s8, %s2466_s8 }
0x13c3   :  { %v2063_v45 = vadd.f32 %v3373_v53, %v2060_v43  ;;  %v2154_v52 = vpop.f32.mrf.mxu1 }
0x13c4   :  { %v2158_v46 = vadd.f32 %v2154_v52, %v177_v49 }
0x13c5   :  { %3058 = vtanh.f32 %v2063_v45  ;;  %v2915_v54 = vpop.f32.mrf.mxu1  ;;  %v2515_v57 = vmul.f32 -1.442695, %v2063_v45 }
0x13c6   :  { %3060 = vtanh.f32 %v2158_v46  ;;  %v2517_v28 = vmul.f32 -1.442695, %v2158_v46 }
0x13c7   :  { %3062 = vpow2.f32 %v2515_v57 }
0x13c8   :  { %3064 = vpow2.f32 %v2517_v28 }
0x13d2   :  { %v3059_v55 = vpop.eup %3058 }
0x13d3   :  { %v3061_v56 = vpop.eup %3060  ;;  %2073 = vrot.lane.b32.xlu0 %v3059_v55, %s3124_s26 }
0x13d4   :  { %2168 = vrot.lane.b32.xlu1 %v3061_v56, %s3124_s26  ;;  %v3063_v26 = vpop.eup %3062 }
0x13d5   :  { %v3065_v50 = vpop.eup %3064  ;;  %v2067_v30 = vadd.f32 1.0, %v3063_v26 }
0x13d6   :  { %v2162_v33 = vadd.f32 1.0, %v3065_v50 }
0x13d7   :  { %3066 = vrcp.f32 %v2067_v30 }
0x13d8   :  { %3068 = vrcp.f32 %v2162_v33 }
0x13e4   :  { %v3067_v53 = vpop.eup %3066 }
0x13e5   :  { %v3069_v58 = vpop.eup %3068  ;;  %v2071_v60 = vmul.f32 %v3067_v53, %v3665_v14  ;;  %v3099_v14 = vld [vmem:[%s3779_s6] ss:$0 sm:$0xff] }
0x13e6   :  { %v2166_v40 = vmul.f32 %v3069_v58, %v3669_v17 }
0x1445   :  { %v2074_v35 = vpop.permute.xlu0 %2073 }
0x1446   :  { %v2169_v31 = vpop.permute.xlu1 %2168  ;;  %v2076_v59 = vmul.f32 %v3067_v53, %v2074_v35 }
0x1447   :  { %v2171_v36 = vmul.f32 %v3069_v58, %v2169_v31 }
0x1448   :  { %2078 = vrot.lane.b32.xlu0 %v2076_v59, %s3125_s27 }
0x1449   :  { %2173 = vrot.lane.b32.xlu1 %v2171_v36, %s3125_s27 }
0x14ba   :  { %v2079_v61 = vpop.permute.xlu0 %2078 }
0x14bb   :  { %v2174_v62 = vpop.permute.xlu1 %2173  ;;  %v2081_v63 = vadd.f32 %v2079_v61, %v2071_v60 }
0x14bc   :  { %v2176_v47 = vadd.f32 %v2174_v62, %v2166_v40 }
0x14bd   :  { %3070 = vtanh.f32 %v2081_v63 }
0x14be   :  { %3072 = vtanh.f32 %v2176_v47 }
0x14ca   :  { %v3071_v0 = vpop.eup %3070 }
0x14cb   :  { %v3073_v2 = vpop.eup %3072  ;;  %2084 = vrot.lane.b32.xlu0 %v3071_v0, %s3124_s26 }
0x14cc   :  { %2179 = vrot.lane.b32.xlu1 %v3073_v2, %s3124_s26 }
0x153d   :  { %v2085_v4 = vpop.permute.xlu0 %2084 }
0x153e   :  { %v2180_v6 = vpop.permute.xlu1 %2179  ;;  %v2087_v1 = vmul.f32 %v3067_v53, %v2085_v4 }
0x153f   :  { %v2182_v51 = vmul.f32 %v3069_v58, %v2180_v6 }
0x1540   :  { %2184 = vrot.lane.b32.xlu0 %v2087_v1, %s3125_s27 }
0x1541   :  { %2259 = vrot.lane.b32.xlu1 %v2182_v51, %s3125_s27 }
0x15b2   :  { %v2185_v5 = vpop.permute.xlu0 %2184 }
0x15b3   :  { %v2260_v7 = vpop.permute.xlu1 %2259  ;;  %2925 = vmatmul.mubr.msk.f32.vlgmr.msra.gmra.mxu0 %vm199_vm2, %v2185_v5 }
0x15b4   :  { %2936 = vmatmul.mubr.msk.f32.vlgmr.msra.gmra.mxu1 %vm199_vm2, %v2260_v7  ;;  %2946 = vmatprep.mubr.msk.f32.mxu0 %vm3123_vm1, %v3122_v3 }
0x15b5   :  { %2939 = vmatpush3.msra.mxu0 %v2361_v24 }
0x15b6   :  { %2940 = vmatprep.subr.mxu0 %v3122_v3 }
0x15b7   :  { %2941 = vmatpush3.msra.mxu0 %v2360_v27 }
0x15b8   :  { %2942 = vmatprep.subr.mxu0 %v3122_v3 }
0x15b9   :  { %2943 = vmatpush3.msra.mxu0 %v2359_v29 }
0x15ba   :  { %2944 = vmatprep.subr.mxu0 %v3122_v3 }
0x15bb   :  { %2945 = vmatpush3.msra.mxu0 %v2358_v25 }
0x1673   :  { %v2254_v8 = vpop.f32.mrf.mxu0 }
0x1674   :  { %v2329_v9 = vpop.f32.mrf.mxu1 }
0x1675   :  { %v2330_v11 = vadd.f32 %v2329_v9, %v2254_v8  ;;  %v2926_v12 = vpop.f32.mrf.mxu0 }
0x1676   :  { %v2937_v13 = vpop.f32.mrf.mxu1 }
0x1677   :  { %v2333_v15 = vadd.f32 %v3099_v14, %v2330_v11 }
0x1679   :  { %3074 = vtanh.f32 %v2333_v15  ;;  %v2520_v17 = vmul.f32 -1.442695, %v2333_v15 }
0x167b   :  { %3076 = vpow2.f32 %v2520_v17 }
0x1686   :  { %v3075_v16 = vpop.eup %3074 }
0x1687   :  { %2343 = vrot.lane.b32.xlu0 %v3075_v16, %s3124_s26 }
0x1688   :  { %v3077_v18 = vpop.eup %3076 }
0x1689   :  { %v2337_v20 = vadd.f32 1.0, %v3077_v18 }
0x168b   :  { %3078 = vrcp.f32 %v2337_v20 }
0x1698   :  { %v3079_v21 = vpop.eup %3078 }
0x1699   :  { %v2341_v22 = vmul.f32 %v3079_v21, %v2081_v63 }
0x16f9   :  { %v2344_v10 = vpop.permute.xlu0 %2343 }
0x16fa   :  { %v2346_v48 = vmul.f32 %v3079_v21, %v2344_v10 }
0x16fc   :  { %2348 = vrot.lane.b32.xlu1 %v2346_v48, %s3125_s27 }
0x176e   :  { %v2349_v23 = vpop.permute.xlu1 %2348 }
0x176f   :  { %v2351_v19 = vadd.f32 %v2349_v23, %v2341_v22 }
0x1771   :  { %3080 = vtanh.f32 %v2351_v19 }
0x177e   :  { %v3081_v32 = vpop.eup %3080 }
0x177f   :  { %2354 = vrot.lane.b32.xlu0 %v3081_v32, %s3124_s26  ;;  %s3100_s26 = scalar_lea.vmem %s2466_s8, 128 }
0x1780   :  { %p3101_p0 = scmp.ne.s32.totalorder %s2466_s8, %s3100_s26  ;;  %p3106_p2 = scmp.lt.s32.totalorder %s3100_s26, %s3100_s26 }
0x1782   :  { %p3107_p3 = por %p3106_p2, %p3105_p1 }
0x1784   :  { %p3108_p4 = pnand %p3107_p3, %p3101_p0 }
0x17f1   :  { %v2355_v34 = vpop.permute.xlu0 %2354 }
0x17f2   :  { %v2357_v37 = vmul.f32 %v3079_v21, %v2355_v34 }
0x17f4   :  { %2370 = vrot.lane.b32.xlu1 %v2357_v37, %s3125_s27 }
0x1866   :  { %v2371_v38 = vpop.permute.xlu1 %2370 }
0x1867   :  { %2947 = vmatmul.mubr.msk.f32.vlgmr.msra.gmra.mxu0 %vm199_vm2, %v2371_v38 }
0x1927   :  { %v2440_v41 = vpop.f32.mrf.mxu0 }
0x1928   :  { %v2441_v42 = vadd.f32 %v2521_v39, %v2440_v41 }
0x1929   :  { %v2948_v43 = vpop.f32.mrf.mxu0 }
0x192a   :  { %v2445_v3 = vsel %vm2444_vm3, %v2441_v42, -inf }
0x192b   :  { %2446 = vmax.xlane.f32.xlu0 %v2445_v3 }
0x19b4   :  { %v2447_v49 = vpop.xlane.xlu0 %2446 }
0x19b5   :  { %v2448_v44 = vsub.f32 %v2441_v42, %v2447_v49 }
0x19b7   :  { %v2449_v45 = vmul.f32 1.442695, %v2448_v44 }
0x19b9   :  { %3082 = vpow2.f32 %v2449_v45 }
0x19c6   :  { %v3083_v52 = vpop.eup %3082 }
0x19c7   :  { %v2451_v46 = vsel %vm2444_vm3, %v3083_v52, 0.0 }
0x19c8   :  { %2452 = vadd.xlane.f32.xlu1 %v2451_v46 }
0x1a51   :  { %v2453_v54 = vpop.xlane.xlu1 %2452 }
0x1a52   :  { %3084 = vlog2.f32 %v2453_v54 }
0x1a5f   :  { %v3085_v55 = vpop.eup %3084 }
0x1a60   :  { %v2455_v56 = vmul.f32 0.6931472, %v3085_v55 }
0x1a62   :  { %v2456_v57 = vadd.f32 %v2455_v56, %v2447_v49 }
0x1a64   :  { %v2457_v28 = vsub.f32 %v2441_v42, %v2456_v57 }
0x1a66   :  { %2458 = vst.msk [vmem:[#allocation2] sm:$0xff] %vm2444_vm3, %v2457_v28 }
0x1a67   :  { %3111 = shalt.err (!%p3108_p4)
}
0x1a68   :  { %2468 = dma.vmem_to_hbm [thread:$0]  %s2466_s8, 128, %s3782_s9, [#allocation3]  }
0x1a69   :  { %3120 = dma.done.wait [#allocation3], 128  }
0x1a6a   :  { %3121 = vsyncadd [#allocation3], 4294967168 }
0x1a6b   :  { %2472 = vsyncpa [#allocation3], 1 }

</bundles_post_ra>
